<compile_context>
chip_gen: v5e
topology: v5e:2x2
jax: 0.10.0
libtpu: 0.0.40
codegen_flags: <defaults>
</compile_context>

<pallas_src>
import jax
import jax.numpy as jnp
from jax.experimental import pallas as pl
from jax.experimental.pallas import tpu as pltpu

N = 128     # linear-system size (lane dimension)
H = 32      # hidden width of the synthetic model
B_BLK = 8   # systems per grid step (sweep 32-64 for large B; 64-128 on v7x)


def _jacobi_block_kernel(
    b2_ref,       # SMEM (1,)            f32 : output bias scalar
    scales_ref,   # VMEM (Bk, 3, 1)      f32 : [1/b_max, 1/m_max, 1] per system
    feats_ref,    # VMEM (Bk, 3, N)      f32 : packed [x, b, diag] rows
    w1t_ref,      # VMEM (H, 3)          f32 : W1^T
    b1_ref,       # VMEM (H, 1)          f32 : b1 as a column
    w2_ref,       # VMEM (H, 1)          f32 : W2 as a column
    mT_ref,       # VMEM (Bk, N, N)      bf16: M^T per system
    out_ref,      # VMEM (Bk, 1, N)      f32 : y_hat rows
):
    b2 = b2_ref[0]

    feats = feats_ref[...]                         # (Bk, 3, N)
    sc = scales_ref[...]                           # (Bk, 3, 1)
    xf = feats * sc                                # x/b_max, b/m_max, diag

    # --- layer 1: contraction over the 3 features as broadcast FMAs (VPU) ---
    w1t = w1t_ref[...]                             # (H, 3)
    h = (w1t[:, 0:1][None] * xf[:, 0:1, :]
         + w1t[:, 1:2][None] * xf[:, 1:2, :]
         + w1t[:, 2:3][None] * xf[:, 2:3, :]
         + b1_ref[...][None])                      # (Bk, H, N)
    h = jnp.maximum(h, 0.0)

    # --- one message-passing step with the scaled operator (M / m_max) ---
    # 1/m_max hoisted off the (N, N) matrix onto the small (H, N) result.
    mT = mT_ref[...].astype(jnp.float32)           # single bf16->f32 upcast, reused twice
    inv_mmax = sc[:, 1:2, :]                       # (Bk, 1, 1)
    msg = jnp.einsum('sjk,skn->sjn', h, mT,
                     preferred_element_type=jnp.float32) * inv_mmax
    h = jnp.maximum(h + msg, 0.0)                  # (Bk, H, N)

    # --- output head: y_dir[s, n] = sum_j w2[j] * h[s, j, n] + b2 ---
    # VPU multiply + sublane reduce (XLU) -> avoids an M=1 MXU weight push.
    y_dir = jnp.sum(w2_ref[...][None] * h, axis=1, keepdims=True) + b2   # (Bk, 1, N)

    # --- Jacobi step-length rescaling: p = M @ y_dir == y_dir @ M^T ---
    p = jnp.einsum('sjn,snk->sjk', y_dir, mT,
                   preferred_element_type=jnp.float32)                   # (Bk, 1, N)
    b_row = feats[:, 1:2, :]                       # un-scaled b
    p_sq = jnp.sum(p * p, axis=-1, keepdims=True)                        # (Bk, 1, 1)
    bp = jnp.sum(p * b_row, axis=-1, keepdims=True)                      # (Bk, 1, 1)
    scaler = jnp.maximum(bp / jnp.maximum(p_sq, 1e-16), 1e-16)
    out_ref[...] = y_dir * scaler


def single_inference_batched(b, m_indices, m_values, params, x=None, *,
                             block_b=B_BLK, mt_dtype=jnp.bfloat16):
    """Batched JAX/Pallas equivalent of SingleInference.forward (no preprocessors).

    b:         (B, N) f32     m_indices: (B, 2, nnz) int32     m_values: (B, nnz) f32
    """
    B, n = b.shape
    b = b.astype(jnp.float32)
    m_values = m_values.astype(jnp.float32)
    if x is None:
        x = jnp.zeros((B, n), jnp.float32)
    x = x.astype(jnp.float32)

    # --- wrapper glue: diagonal extraction + densify the COO matrix as M^T ---
    # TODO(synk): for banded matrices the dense scatter + 64 KiB/system M^T DMA
    # could be replaced by scalar-prefetched band values and a pltpu.roll stencil
    # in-kernel (~30-40x fewer HBM bytes); kept generic/dense since the module
    # accepts arbitrary COO.
    def _densify(idxs, vals):
        r, c = idxs[0], idxs[1]
        diag = jnp.zeros((n,), jnp.float32).at[r].add(jnp.where(r == c, vals, 0.0))
        mT = jnp.zeros((n, n), jnp.float32).at[c, r].add(vals)   # M^T directly
        return diag, mT

    diag, mT = jax.vmap(_densify)(m_indices, m_values)
    mT = mT.astype(mt_dtype)   # bf16 in HBM: M^T dominates per-system bytes

    # inf-norm scales (clamped), packed per system as [1/b_max, 1/m_max, 1]
    b_max = jnp.maximum(jnp.max(jnp.abs(b), axis=-1), 1e-16)
    m_max = jnp.maximum(jnp.max(jnp.abs(m_values), axis=-1), 1e-16)
    scales = jnp.stack([1.0 / b_max, 1.0 / m_max, jnp.ones_like(b_max)],
                       axis=-1).astype(jnp.float32).reshape(B, 3, 1)

    feats = jnp.stack([x, b, diag], axis=1)        # (B, 3, N): one DMA per block

    w1, b1, w2, b2 = params
    w1t = w1.T.astype(jnp.float32)                 # (H, 3)
    b1c = b1.reshape(-1, 1).astype(jnp.float32)    # (H, 1)
    w2c = w2.reshape(-1, 1).astype(jnp.float32)    # (H, 1)
    b2s = b2.reshape(1).astype(jnp.float32)        # (1,) scalar -> SMEM

    # pad the batch up to a whole number of blocks (padded systems produce
    # finite junk -- zero M, unit scales -- and are sliced off below)
    n_blocks = pl.cdiv(B, block_b)
    Bp = n_blocks * block_b
    if Bp != B:
        pad = Bp - B
        feats = jnp.pad(feats, ((0, pad), (0, 0), (0, 0)))
        mT = jnp.pad(mT, ((0, pad), (0, 0), (0, 0)))
        scales = jnp.pad(scales, ((0, pad), (0, 0), (0, 0)), constant_values=1.0)

    y = pl.pallas_call(
        _jacobi_block_kernel,
        out_shape=jax.ShapeDtypeStruct((Bp, 1, n), jnp.float32),
        grid=(n_blocks,),
        in_specs=[
            pl.BlockSpec(memory_space=pltpu.MemorySpace.SMEM),      # b2 (1,)
            pl.BlockSpec((block_b, 3, 1), lambda i: (i, 0, 0)),     # scales
            pl.BlockSpec((block_b, 3, n), lambda i: (i, 0, 0)),     # feats
            pl.BlockSpec(w1t.shape, lambda i: (0, 0)),              # W1^T
            pl.BlockSpec(b1c.shape, lambda i: (0, 0)),              # b1
            pl.BlockSpec(w2c.shape, lambda i: (0, 0)),              # W2 column
            pl.BlockSpec((block_b, n, n), lambda i: (i, 0, 0)),     # M^T (bf16)
        ],
        out_specs=pl.BlockSpec((block_b, 1, n), lambda i: (i, 0, 0)),
        compiler_params=pltpu.CompilerParams(
            dimension_semantics=("parallel",),
            vmem_limit_bytes=32 * 1024 * 1024),
    )(b2s, scales, feats, w1t, b1c, w2c, mT)

    return y.reshape(Bp, n)[:B]


def single_inference(b, m_indices, m_values, params, x=None):
    """Single-system wrapper matching the module's forward signature."""
    y = single_inference_batched(
        b[None], m_indices[None], m_values[None], params,
        None if x is None else x[None])
    return y[0]


def single_inference_ref(b, m_indices, m_values, params, x=None):
    """Pure-JAX (Precision.HIGHEST) reference of the same synthetic graph."""
    n = b.shape[0]
    b = b.astype(jnp.float32)
    m_values = m_values.astype(jnp.float32)
    if x is None:
        x = jnp.zeros((n,), jnp.float32)
    x = x.astype(jnp.float32)
    r, c = m_indices[0], m_indices[1]
    diag = jnp.zeros((n,), jnp.float32).at[r].add(jnp.where(r == c, m_values, 0.0))
    m_dense = jnp.zeros((n, n), jnp.float32).at[r, c].add(m_values)
    b_max = jnp.maximum(jnp.max(jnp.abs(b)), 1e-16)
    m_max = jnp.maximum(jnp.max(jnp.abs(m_values)), 1e-16)
    w1, b1, w2, b2 = params
    hp = jax.lax.Precision.HIGHEST
    xf = jnp.stack([x / b_max, b / m_max, diag], axis=-1)            # (N, 3)
    h = jnp.maximum(jnp.dot(xf, w1, precision=hp) + b1, 0.0)         # (N, H)
    msg = jnp.dot(m_dense / m_max, h, precision=hp)
    h = jnp.maximum(h + msg, 0.0)
    y_dir = (jnp.dot(h, w2, precision=hp) + b2).reshape(n)
    p = jnp.dot(m_dense, y_dir, precision=hp)
    p_sq = jnp.sum(p * p)
    bp = jnp.dot(p, b, precision=hp)
    scaler = jnp.maximum(bp / jnp.maximum(p_sq, 1e-16), 1e-16)
    return y_dir * scaler


def init_params(key):
    k1, k2, k3, k4 = jax.random.split(key, 4)
    w1 = jax.random.normal(k1, (3, H), jnp.float32) * 0.5
    b1 = jax.random.normal(k2, (1, H), jnp.float32) * 0.1
    w2 = jax.random.normal(k3, (H, 1), jnp.float32) * 0.5
    b2 = jax.random.normal(k4, (1, 1), jnp.float32) * 0.1
    return w1, b1, w2, b2


if __name__ == "__main__":
    key = jax.random.PRNGKey(0)
    kb, kp = jax.random.split(key)

    # 16 sparse tridiagonal, diagonally-dominant systems in COO form
    # (values chosen to be exactly bf16-representable).
    B = 16
    idx = jnp.arange(N, dtype=jnp.int32)
    rows = jnp.concatenate([idx, idx[:-1], idx[1:]])
    cols = jnp.concatenate([idx, idx[1:], idx[:-1]])
    base_vals = jnp.concatenate([
        jnp.full((N,), 4.0, jnp.float32),
        jnp.full((N - 1,), -1.0, jnp.float32),
        jnp.full((N - 1,), -1.0, jnp.float32),
    ])
    m_indices = jnp.stack([rows, cols])                               # (2, nnz)
    m_indices_b = jnp.broadcast_to(m_indices, (B,) + m_indices.shape) # (B, 2, nnz)
    sys_scale = (1.0 + 0.25 * jnp.arange(B, dtype=jnp.float32))[:, None]
    m_values_b = sys_scale * base_vals[None, :]                       # (B, nnz)
    b_b = jax.random.normal(kb, (B, N), jnp.float32)

    params = init_params(kp)

    # TODO(synk): the optional `preprocessors` branch (20-column Jacobi
    # augmentation features) is not exercised -- the module defaults to ().
    y_hat = single_inference_batched(b_b, m_indices_b, m_values_b, params, x=None,
                                     block_b=B_BLK)   # grid = (2,) here
    jax.block_until_ready(y_hat)
    assert y_hat.shape == (B, N) and y_hat.dtype == jnp.float32

    # Tolerance check against the pure-JAX Precision.HIGHEST reference.
    # Tolerance has headroom because in-kernel f32 matmuls run at default MXU
    # precision (the bf16 M^T storage is exact for these matrix values).
    max_err = 0.0
    for i in range(B):
        ref = single_inference_ref(b_b[i], m_indices_b[i], m_values_b[i], params)
        err = float(jnp.max(jnp.abs(y_hat[i] - ref)))
        max_err = max(max_err, err)
        assert jnp.allclose(y_hat[i], ref, rtol=2e-2, atol=2e-2), (i, err)

    print("KERNEL_OK")
</pallas_src>

<mosaic_0001>
module attributes {stable_mosaic.version = 11 : i64} {
  func.func @_jacobi_block_kernel(%arg0: i32, %arg1: memref<1xf32, #tpu.memory_space<smem>>, %arg2: memref<8x3x1xf32, #tpu.memory_space<vmem>>, %arg3: memref<8x3x128xf32, #tpu.memory_space<vmem>>, %arg4: memref<32x3xf32, #tpu.memory_space<vmem>>, %arg5: memref<32x1xf32, #tpu.memory_space<vmem>>, %arg6: memref<32x1xf32, #tpu.memory_space<vmem>>, %arg7: memref<8x128x128xbf16, #tpu.memory_space<vmem>>, %arg8: memref<8x1x128xf32, #tpu.memory_space<vmem>>) attributes {dimension_semantics = [#tpu.dimension_semantics<parallel>], iteration_bounds = array<i64: 2>, scalar_prefetch = 0 : i64, scratch_operands = 0 : i64, tpu.core_type = #tpu.core_type<tc>, window_params = [{transform_indices = @transform_0, window_bounds = array<i64: 1>}, {transform_indices = @transform_1, window_bounds = array<i64: 8, 3, 1>}, {transform_indices = @transform_2, window_bounds = array<i64: 8, 3, 128>}, {pipeline_mode = #tpu.pipeline_mode<synchronous>, transform_indices = @transform_3, window_bounds = array<i64: 32, 3>}, {pipeline_mode = #tpu.pipeline_mode<synchronous>, transform_indices = @transform_4, window_bounds = array<i64: 32, 1>}, {pipeline_mode = #tpu.pipeline_mode<synchronous>, transform_indices = @transform_5, window_bounds = array<i64: 32, 1>}, {transform_indices = @transform_6, window_bounds = array<i64: 8, 128, 128>}, {transform_indices = @transform_7, window_bounds = array<i64: 8, 1, 128>}]} {
    %c0 = arith.constant 0 : index
    %0 = memref.load %arg1[%c0] : memref<1xf32, #tpu.memory_space<smem>>
    %c0_0 = arith.constant 0 : index
    %c0_1 = arith.constant 0 : index
    %c0_2 = arith.constant 0 : index
    %1 = vector.load %arg3[%c0_0, %c0_1, %c0_2] : memref<8x3x128xf32, #tpu.memory_space<vmem>>, vector<8x3x128xf32>
    %c0_3 = arith.constant 0 : index
    %c0_4 = arith.constant 0 : index
    %c0_5 = arith.constant 0 : index
    %2 = vector.load %arg2[%c0_3, %c0_4, %c0_5] : memref<8x3x1xf32, #tpu.memory_space<vmem>>, vector<8x3x1xf32>
    %3 = vector.broadcast %2 : vector<8x3x1xf32> to vector<8x3x128xf32>
    %4 = arith.mulf %1, %3 : vector<8x3x128xf32>
    %c0_6 = arith.constant 0 : index
    %c0_7 = arith.constant 0 : index
    %5 = vector.load %arg4[%c0_6, %c0_7] : memref<32x3xf32, #tpu.memory_space<vmem>>, vector<32x3xf32>
    %6 = vector.extract_strided_slice %5 {offsets = [0, 0], sizes = [32, 1], strides = [1, 1]} : vector<32x3xf32> to vector<32x1xf32>
    %7 = vector.shape_cast %6 : vector<32x1xf32> to vector<1x32x1xf32>
    %8 = vector.extract_strided_slice %4 {offsets = [0, 0, 0], sizes = [8, 1, 128], strides = [1, 1, 1]} : vector<8x3x128xf32> to vector<8x1x128xf32>
    %9 = vector.broadcast %7 : vector<1x32x1xf32> to vector<8x32x128xf32>
    %10 = vector.broadcast %8 : vector<8x1x128xf32> to vector<8x32x128xf32>
    %11 = arith.mulf %9, %10 : vector<8x32x128xf32>
    %12 = vector.extract_strided_slice %5 {offsets = [0, 1], sizes = [32, 1], strides = [1, 1]} : vector<32x3xf32> to vector<32x1xf32>
    %13 = vector.shape_cast %12 : vector<32x1xf32> to vector<1x32x1xf32>
    %14 = vector.extract_strided_slice %4 {offsets = [0, 1, 0], sizes = [8, 1, 128], strides = [1, 1, 1]} : vector<8x3x128xf32> to vector<8x1x128xf32>
    %15 = vector.broadcast %13 : vector<1x32x1xf32> to vector<8x32x128xf32>
    %16 = vector.broadcast %14 : vector<8x1x128xf32> to vector<8x32x128xf32>
    %17 = arith.mulf %15, %16 : vector<8x32x128xf32>
    %18 = arith.addf %11, %17 : vector<8x32x128xf32>
    %19 = vector.extract_strided_slice %5 {offsets = [0, 2], sizes = [32, 1], strides = [1, 1]} : vector<32x3xf32> to vector<32x1xf32>
    %20 = vector.shape_cast %19 : vector<32x1xf32> to vector<1x32x1xf32>
    %21 = vector.extract_strided_slice %4 {offsets = [0, 2, 0], sizes = [8, 1, 128], strides = [1, 1, 1]} : vector<8x3x128xf32> to vector<8x1x128xf32>
    %22 = vector.broadcast %20 : vector<1x32x1xf32> to vector<8x32x128xf32>
    %23 = vector.broadcast %21 : vector<8x1x128xf32> to vector<8x32x128xf32>
    %24 = arith.mulf %22, %23 : vector<8x32x128xf32>
    %25 = arith.addf %18, %24 : vector<8x32x128xf32>
    %c0_8 = arith.constant 0 : index
    %c0_9 = arith.constant 0 : index
    %26 = vector.load %arg5[%c0_8, %c0_9] : memref<32x1xf32, #tpu.memory_space<vmem>>, vector<32x1xf32>
    %27 = vector.shape_cast %26 : vector<32x1xf32> to vector<1x32x1xf32>
    %28 = vector.broadcast %27 : vector<1x32x1xf32> to vector<8x32x128xf32>
    %29 = arith.addf %25, %28 : vector<8x32x128xf32>
    %cst = arith.constant 0.000000e+00 : f32
    %30 = vector.broadcast %cst : f32 to vector<8x32x128xf32>
    %31 = arith.maximumf %29, %30 : vector<8x32x128xf32>
    %c0_10 = arith.constant 0 : index
    %c0_11 = arith.constant 0 : index
    %c0_12 = arith.constant 0 : index
    %32 = vector.load %arg7[%c0_10, %c0_11, %c0_12] : memref<8x128x128xbf16, #tpu.memory_space<vmem>>, vector<8x128x128xbf16>
    %33 = arith.extf %32 : vector<8x128x128xbf16> to vector<8x128x128xf32>
    %34 = vector.extract_strided_slice %2 {offsets = [0, 1, 0], sizes = [8, 1, 1], strides = [1, 1, 1]} : vector<8x3x1xf32> to vector<8x1x1xf32>
    "tpu.trace_start"() <{level = 10 : i32, message = "sjk,skn->sjn"}> : () -> ()
    %cst_13 = arith.constant dense<0.000000e+00> : vector<8x32x128xf32>
    %35 = tpu.matmul %31, %33, %cst_13 {dimension_numbers = #tpu.dot_dimension_numbers<[2], [1], [1], [2], [0, 0, 0, 1, 1, 2], [0], [0]>} : vector<8x32x128xf32>, vector<8x128x128xf32>, vector<8x32x128xf32> -> vector<8x32x128xf32>
    "tpu.trace_stop"() : () -> ()
    %36 = vector.broadcast %34 : vector<8x1x1xf32> to vector<8x32x128xf32>
    %37 = arith.mulf %35, %36 : vector<8x32x128xf32>
    %38 = arith.addf %31, %37 : vector<8x32x128xf32>
    %cst_14 = arith.constant 0.000000e+00 : f32
    %39 = vector.broadcast %cst_14 : f32 to vector<8x32x128xf32>
    %40 = arith.maximumf %38, %39 : vector<8x32x128xf32>
    %c0_15 = arith.constant 0 : index
    %c0_16 = arith.constant 0 : index
    %41 = vector.load %arg6[%c0_15, %c0_16] : memref<32x1xf32, #tpu.memory_space<vmem>>, vector<32x1xf32>
    %42 = vector.shape_cast %41 : vector<32x1xf32> to vector<1x32x1xf32>
    %43 = vector.broadcast %42 : vector<1x32x1xf32> to vector<8x32x128xf32>
    %44 = arith.mulf %43, %40 : vector<8x32x128xf32>
    %cst_17 = arith.constant dense<0.000000e+00> : vector<8x128xf32>
    %45 = vector.multi_reduction <add>, %44, %cst_17 [1] : vector<8x32x128xf32> to vector<8x128xf32>
    %46 = vector.shape_cast %45 : vector<8x128xf32> to vector<8x1x128xf32>
    %47 = vector.broadcast %0 : f32 to vector<8x1x128xf32>
    %48 = arith.addf %46, %47 : vector<8x1x128xf32>
    "tpu.trace_start"() <{level = 10 : i32, message = "sjn,snk->sjk"}> : () -> ()
    %cst_18 = arith.constant dense<0.000000e+00> : vector<8x1x128xf32>
    %49 = tpu.matmul %48, %33, %cst_18 {dimension_numbers = #tpu.dot_dimension_numbers<[2], [1], [1], [2], [0, 0, 0, 1, 1, 2], [0], [0]>} : vector<8x1x128xf32>, vector<8x128x128xf32>, vector<8x1x128xf32> -> vector<8x1x128xf32>
    "tpu.trace_stop"() : () -> ()
    %50 = vector.extract_strided_slice %1 {offsets = [0, 1, 0], sizes = [8, 1, 128], strides = [1, 1, 1]} : vector<8x3x128xf32> to vector<8x1x128xf32>
    %51 = arith.mulf %49, %49 : vector<8x1x128xf32>
    %cst_19 = arith.constant dense<0.000000e+00> : vector<8x1xf32>
    %52 = vector.multi_reduction <add>, %51, %cst_19 [2] : vector<8x1x128xf32> to vector<8x1xf32>
    %53 = vector.shape_cast %52 : vector<8x1xf32> to vector<8x1x1xf32>
    %54 = arith.mulf %49, %50 : vector<8x1x128xf32>
    %cst_20 = arith.constant dense<0.000000e+00> : vector<8x1xf32>
    %55 = vector.multi_reduction <add>, %54, %cst_20 [2] : vector<8x1x128xf32> to vector<8x1xf32>
    %56 = vector.shape_cast %55 : vector<8x1xf32> to vector<8x1x1xf32>
    %cst_21 = arith.constant 1.000000e-16 : f32
    %57 = vector.broadcast %cst_21 : f32 to vector<8x1x1xf32>
    %58 = arith.maximumf %53, %57 : vector<8x1x1xf32>
    %59 = arith.divf %56, %58 : vector<8x1x1xf32>
    %cst_22 = arith.constant 1.000000e-16 : f32
    %60 = vector.broadcast %cst_22 : f32 to vector<8x1x1xf32>
    %61 = arith.maximumf %59, %60 : vector<8x1x1xf32>
    %62 = vector.broadcast %61 : vector<8x1x1xf32> to vector<8x1x128xf32>
    %63 = arith.mulf %48, %62 : vector<8x1x128xf32>
    %c0_23 = arith.constant 0 : index
    %c0_24 = arith.constant 0 : index
    %c0_25 = arith.constant 0 : index
    %64 = vector.load %arg8[%c0_23, %c0_24, %c0_25] : memref<8x1x128xf32, #tpu.memory_space<vmem>>, vector<8x1x128xf32>
    tpu.vector_store %arg8[%c0_23, %c0_24, %c0_25], %63 {strides = array<i32>} : memref<8x1x128xf32, #tpu.memory_space<vmem>>, vector<8x1x128xf32>,
    return
  }
  func.func @transform_0(%arg0: i32) -> i32 {
    %c0_i32 = arith.constant 0 : i32
    %c0_i32_0 = arith.constant 0 : i32
    return %c0_i32 : i32
  }
  func.func @transform_1(%arg0: i32) -> (i32, i32, i32) {
    %c0_i32 = arith.constant 0 : i32
    %c0_i32_0 = arith.constant 0 : i32
    %c0_i32_1 = arith.constant 0 : i32
    return %arg0, %c0_i32, %c0_i32_0 : i32, i32, i32
  }
  func.func @transform_2(%arg0: i32) -> (i32, i32, i32) {
    %c0_i32 = arith.constant 0 : i32
    %c0_i32_0 = arith.constant 0 : i32
    %c0_i32_1 = arith.constant 0 : i32
    return %arg0, %c0_i32, %c0_i32_0 : i32, i32, i32
  }
  func.func @transform_3(%arg0: i32) -> (i32, i32) {
    %c0_i32 = arith.constant 0 : i32
    %c0_i32_0 = arith.constant 0 : i32
    %c0_i32_1 = arith.constant 0 : i32
    return %c0_i32, %c0_i32_0 : i32, i32
  }
  func.func @transform_4(%arg0: i32) -> (i32, i32) {
    %c0_i32 = arith.constant 0 : i32
    %c0_i32_0 = arith.constant 0 : i32
    %c0_i32_1 = arith.constant 0 : i32
    return %c0_i32, %c0_i32_0 : i32, i32
  }
  func.func @transform_5(%arg0: i32) -> (i32, i32) {
    %c0_i32 = arith.constant 0 : i32
    %c0_i32_0 = arith.constant 0 : i32
    %c0_i32_1 = arith.constant 0 : i32
    return %c0_i32, %c0_i32_0 : i32, i32
  }
  func.func @transform_6(%arg0: i32) -> (i32, i32, i32) {
    %c0_i32 = arith.constant 0 : i32
    %c0_i32_0 = arith.constant 0 : i32
    %c0_i32_1 = arith.constant 0 : i32
    return %arg0, %c0_i32, %c0_i32_0 : i32, i32, i32
  }
  func.func @transform_7(%arg0: i32) -> (i32, i32, i32) {
    %c0_i32 = arith.constant 0 : i32
    %c0_i32_0 = arith.constant 0 : i32
    %c0_i32_1 = arith.constant 0 : i32
    return %arg0, %c0_i32, %c0_i32_0 : i32, i32, i32
  }
}

</mosaic_0001>

<bundles_post_ra>
// kernel: tpu_custom_call.1
= control target key start
LH: loop header
LB: loop body
LE: loop exit
PB: predicated region body
PF: predicated region fallthrough
CT: control target
= control target key end

     0   :  { %s4436_s0 = inlined_call_operand.<no memory space> [shape: f32[1], index: 0, kind: input, shape index: {}]   ;;  %s4437_s1 = inlined_call_operand.vmem [shape: f32[16,3,1], index: 1, kind: input, shape index: {}]   ;;  %s4438_s2 = inlined_call_operand.vmem [shape: f32[16,3,128], index: 2, kind: input, shape index: {}]   ;;  %s4439_s3 = inlined_call_operand.vmem [shape: f32[32,3], index: 3, kind: input, shape index: {}]   ;;  %s4440_s4 = inlined_call_operand.vmem [shape: f32[32,1], index: 4, kind: input, shape index: {}]   ;;  %s4441_s5 = inlined_call_operand.vmem [shape: f32[32,1], index: 5, kind: input, shape index: {}]   ;;  %s4442_s6 = inlined_call_operand.hbm [shape: bf16[16,128,128], index: 6, kind: input, shape index: {}]   ;;  %s4443_s7 = inlined_call_operand.hbm [shape: f32[16,1,128], index: 7, kind: output, shape index: {}]  }
   0x1   :  { %12 = sst [smem:[#allocation2]] %s4436_s0 }
   0x2   :  { %13 = vsyncpa [#allocation4], 0 }
   0x3   :  { %15 = vsyncpa [#allocation4 + $0x1], 0 }
   0x4   :  { %16 = vsyncpa [#allocation5], 0 }
   0x5   :  { %18 = vsyncpa [#allocation5 + $0x1], 0  ;;  %s2611_s26 = smov 0   ;;  %s2613_s27 = smov 0  }
   0x6   :  { %s2615_s28 = smov 0   ;;  %s2617_s29 = smov 0  }
   0x7 LB: > { %s2632_s0 = sadd.s32 4294967295, %s2559_s29   ;;  %s2006_s30 = sadd.s32 4294967294, %s2559_s29   ;;  %s2559_s29 = sphi %s2617_s29, %s4999_s29   ;;  %s2555_s28 = sphi %s2615_s28, %s4998_s28   ;;  %s2551_s27 = sphi %s2613_s27, %s4997_s27   ;;  %s2547_s26 = sphi %s2611_s26, %s4996_s26  }
   0x8   : > { %s2636_s8 = sadd.s32 1, %s2559_s29   ;;  %s167_s9 = sadd.s32 1, %s2555_s28 }
   0x9   : > { %s164_s10 = ssub.s32 %s2559_s29, %s2636_s8  ;;  %p174_p0 = scmp.ne.s32.totalorder %s2555_s28, %s2551_s27 }
   0xa   : > { %p165_p1 = scmp.eq.s32.totalorder %s164_s10, 0  ;;  %p175_p2 = scmp.eq.s32.totalorder %s2559_s29, 0 }
   0xb   : > { %p180_p3 = scmp.ne.s32.totalorder %s2551_s27, %s2547_s26  ;;  %p181_p4 = scmp.eq.s32.totalorder %s2632_s0, 0 }
   0xc   : > { %s2648_s11 = scalar_select %p165_p1, %s2555_s28, %s167_s9  }
   0xd   : > { %p2650_p5 = por %p175_p2, %p174_p0  ;;  %p2654_p6 = por %p181_p4, %p180_p3 }
   0xe   : > { %p204_p7 = scmp.eq.s32.totalorder %s2632_s0, 1  ;;  %p210_p8 = scmp.eq.s32.totalorder %s2006_s30, 1 }
   0xf   : > { %p2373_p10 = scmp.lt.s32.totalorder %s2559_s29, 2  ;;  %s260_s16 = sand.u32 1, %s2555_s28  }
  0x10   : > { %p2661_p11 = por %p204_p7, %p174_p0  ;;  %p2665_p12 = por %p210_p8, %p180_p3 }
  0x11   : > { %s2025_s17 = sshll.u32 %s2559_s29, 9  ;;  %s2009_s18 = sshll.u32 %s260_s16, 9 }
  0x12   : > { %s270_s21 = scalar_lea.hbm %s4442_s6, %s2025_s17  ;;  %s264_s23 = scalar_lea.vmem [#allocation3], %s2009_s18 }
  0x13   : > { %s271_s22 = sshll.u32 %s270_s21, 4  ;;  %s273_s24 = sshll.u32 %s264_s23, 4  ;;  %s272_s22 = int_to_ptr.hbm [resolvable:$true] %s271_s22  ;;  %s274_s24 = int_to_ptr.vmem [resolvable:$true] %s273_s24 }
  0x14   : > { %p2676_p13 = pnand %p2373_p10, %p2650_p5  ;;  %p2013_p0 = scmp.ge.s32.totalorder %s2559_s29, 1 }
  0x15   : > { %p281_p1 = scmp.lt.s32.totalorder %s2559_s29, 3  ;;  %s261_s30 = scalar_lea.sflag [#allocation4], %s260_s16 }
  0x16   : > { %s2463_s9 = sshra.s32 %s272_s22, 4  ;;  %p2467_p3 = pneg %p2676_p13  ;;  %s2464_s9 = int_to_ptr.hbm [resolvable:$true] %s2463_s9 }
  0x17   : > { %s2465_s10 = scalar_lea.hbm %s2464_s9, 512  ;;  %s2470_s12 = scalar_lea.hbm %s4442_s6, 1024 }
  0x18   : > { %p2466_p2 = scmp.ne.s32.totalorder %s2464_s9, %s2465_s10  ;;  %p2471_p5 = scmp.lt.s32.totalorder %s2464_s9, %s4442_s6 }
  0x19   : > { %p2472_p8 = scmp.lt.s32.totalorder %s2470_s12, %s2465_s10 }
  0x1a   : > { %p2468_p4 = pnand %p2467_p3, %p2466_p2 }
  0x1b   : > { %p2473_p10 = por %p2472_p8, %p2471_p5 }
  0x1c   : > { %p2469_p7 = pneg %p2468_p4 }
  0x1e   : > { %p2474_p9 = pnand %p2473_p10, %p2469_p7 }
  0x20   : > { %2477 = shalt.err (!%p2474_p9)
}
  0x21   : > { %s2561_s16 = smov 64   ;;  %s2562_s21 = smov 4  }
  0x22   : > { %2368 = dma.hbm_to_vmem [thread:$0]  (!%p2676_p13), %s272_s22, 8192, %s274_s24, %s261_s30, %s2561_s16, %s2561_s16, %s2562_s21  }
  0x23   : > { %p282_p2 = pnand %p2013_p0, %p281_p1 }
  0x25   : > { %285 = sbr.rel (%p282_p2) target bundleno = 715 (0x2cb), region = 48 }
  0x2a   : > { %s2697_s23 = sand.u32 1, %s2551_s27  }
  0x2b   : > { %s2014_s9 = sshll.u32 %s2697_s23, 9  ;;  %s288_s10 = scalar_lea.sflag [#allocation4], %s2697_s23 }
  0x2c   : > { %s2701_s17 = scalar_lea.vmem [#allocation3], %s2014_s9 }
  0x2d   : > { %2538 = dma.done.wait (%p2654_p6), %s288_s10, 8192  }
  0x2e   : > { %2540 = vsyncadd (%p2654_p6), %s288_s10, 4294959104  ;;  %s2708_s22 = sshll.u32 %s2632_s0, 3  ;;  %v2563_v0 = vmov 2   ;;  %v2564_v1 = vmov 0   ;;  %v412_v2 = vld [vmem:[%s4439_s3] sm:$0xff]  ;;  %v2565_v6 = vmov 1  }
  0x2f   : > { %2417 = vset.pattern.permute.xlu2 %v2563_v0  ;;  %2415 = vset.pattern.permute.xlu1 %v2564_v1  ;;  %p334_p9 = scmp.lt.s32.totalorder %s2708_s22, 15  ;;  %v652_v5 = vld [vmem:[%s4440_s4] sm:$0xff]  ;;  %v413_v8 = vld [vmem:[%s4439_s3 + $0x8] sm:$0xff]  ;;  %v414_v11 = vld [vmem:[%s4439_s3 + $0x10] sm:$0xff]  ;;  %s347_s10 = sld [smem:[#allocation2]]  ;;  %vm1661_vm0 = vcmask 1040384  }
  0x30   : > { %2414 = vset.pattern.permute.xlu0 %v2564_v1  ;;  %565 = vperm.xlu2 %2417, %v412_v2   ;;  %v653_v10 = vld [vmem:[%s4440_s4 + $0x8] sm:$0xff]  ;;  %v415_v12 = vld [vmem:[%s4439_s3 + $0x18] sm:$0xff]  ;;  %v654_v14 = vld [vmem:[%s4440_s4 + $0x10] sm:$0xff]  ;;  %s2015_s19 = sshll.u32 %s2697_s23, 3 }
  0x31   : > { %s2712_s24 = scalar_select %p334_p9, %s2708_s22, 15  ;;  %418 = vperm.xlu1 %2415, %v412_v2   ;;  %v1356_v15 = vld [vmem:[%s4441_s5] sm:$0xff]  ;;  %v1359_v16 = vld [vmem:[%s4441_s5 + $0x18] sm:$0xff]  ;;  %v2766_v22 = vld [vmem:[%s2701_s17 + $0xb0] sm:$0xff]  }
  0x32   : > { %v655_v17 = vld [vmem:[%s4440_s4 + $0x18] sm:$0xff]  ;;  %v2773_v27 = vld [vmem:[%s2701_s17 + $0xf0] sm:$0xff]   ;;  %v4493_v29 = vunpack.c.h.bf16 %v2766_v22  ;;  %v4487_v31 = vunpack.c.l.bf16 %v2766_v22  ;;  %v2795_v33 = vld [vmem:[%s2701_s17 + $0xa8] sm:$0xff]   ;;  %s4327_s20 = scalar_lea.vmem [#allocation6], %s2015_s19 }
  0x33   : > { %s2017_s25 = sshll.u32 %s2712_s24, 2  ;;  %v2760_v20 = vld [vmem:[%s2701_s17 + $0xb8] sm:$0xff]   ;;  %4667 = vst [vmem:[#allocation9_spill] sm:$0xff] %v2773_v27  ;;  %v4492_v30 = vunpack.c.h.bf16 %v2773_v27  ;;  %v1358_v32 = vld [vmem:[%s4441_s5 + $0x10] sm:$0xff]  ;;  %v4482_v34 = vunpack.c.l.bf16 %v2773_v27  ;;  %v2802_v36 = vld [vmem:[%s2701_s17 + $0xe8] sm:$0xff]   ;;  %v4480_v38 = vunpack.c.h.bf16 %v2795_v33  ;;  %v4463_v39 = vunpack.c.l.bf16 %v2795_v33 }
  0x34   : > { %s2720_s18 = scalar_lea.vmem %s4437_s1, %s2017_s25  ;;  %v2763_v21 = vld [vmem:[%s2701_s17 + $0xf8] sm:$0xff]   ;;  %v4508_v24 = vunpack.c.h.bf16 %v2760_v20  ;;  %v4498_v25 = vunpack.c.l.bf16 %v2760_v20  ;;  %4668 = vst [vmem:[#allocation10_spill] sm:$0xff] %v2795_v33  ;;  %v1357_v37 = vld [vmem:[%s4441_s5 + $0x8] sm:$0xff]  ;;  %v4474_v41 = vunpack.c.h.bf16 %v2802_v36  ;;  %v2824_v42 = vld [vmem:[%s2701_s17 + $0xa0] sm:$0xff]   ;;  %v4460_v47 = vunpack.c.l.bf16 %v2802_v36  ;;  %s3053_s9 = scalar_lea.vmem %s4438_s2, %s2017_s25 }
  0x35   : > { %v358_v3 = vld [vmem:[%s2720_s18 + $0x8] sm:$0x7]  ;;  %v359_v4 = vld [vmem:[%s2720_s18 + $0xc] sm:$0x7]  ;;  %v356_v7 = vld [vmem:[%s2720_s18] sm:$0x7]  ;;  %v4502_v26 = vunpack.c.h.bf16 %v2763_v21  ;;  %v4497_v28 = vunpack.c.l.bf16 %v2763_v21  ;;  %v4457_v43 = vunpack.c.h.bf16 %v2824_v42  ;;  %v4452_v48 = vunpack.c.l.bf16 %v2824_v42 }
  0x36   : > { %376 = vperm.xlu0 %2414, %v358_v3   ;;  %v357_v9 = vld [vmem:[%s2720_s18 + $0x4] sm:$0x7]  ;;  %v362_v13 = vld [vmem:[%s2720_s18 + $0x18] sm:$0x7]  ;;  %v363_v18 = vld [vmem:[%s2720_s18 + $0x1c] sm:$0x7]  ;;  %1054 = vmatpush.msra.mxu2 %v4508_v24 }
  0x37   : > { %v361_v19 = vld [vmem:[%s2720_s18 + $0x14] sm:$0x7]  ;;  %v360_v23 = vld [vmem:[%s2720_s18 + $0x10] sm:$0x7]  ;;  %1083 = vmatpush.msra.mxu3 %v4502_v26  ;;  %v2799_v35 = vld [vmem:[%s2701_s17 + $0x38] sm:$0xff]   ;;  %4669 = vst [vmem:[#allocation11_spill] sm:$0xff] %v2802_v36 }
  0x38   : > { %2418 = vset.pattern.permute.xlu2 %v2564_v1  ;;  %1055 = vmatpush.msra.mxu2 %v4498_v25  ;;  %v4501_v40 = vunpack.c.h.bf16 %v2799_v35  ;;  %4670 = vst [vmem:[#allocation12_spill] sm:$0xff] %v2824_v42  ;;  %v2828_v44 = vld [vmem:[%s2701_s17 + $0x78] sm:$0xff]   ;;  %v4499_v45 = vunpack.c.l.bf16 %v2799_v35  ;;  %v2837_v49 = vld [vmem:[%s2701_s17 + $0x30] sm:$0xff]   ;;  %v2840_v50 = vld [vmem:[%s2701_s17 + $0xe0] sm:$0xff]  }
  0x39   : > { %2416 = vset.pattern.permute.xlu1 %v2565_v6  ;;  %658 = vperm.xlu2 %2418, %v652_v5   ;;  %v4509_v46 = vunpack.c.h.bf16 %v2828_v44  ;;  %4671 = vst [vmem:[#allocation13_spill] sm:$0xff] %v2840_v50  ;;  %v4495_v51 = vunpack.c.h.bf16 %v2837_v49  ;;  %v4507_v52 = vunpack.c.l.bf16 %v2828_v44  ;;  %v4456_v53 = vunpack.c.h.bf16 %v2840_v50  ;;  %v2850_v54 = vld [vmem:[%s2701_s17 + $0x98] sm:$0xff]   ;;  %v2859_v57 = vld [vmem:[%s2701_s17 + $0x70] sm:$0xff]   ;;  %v2863_v59 = vld [vmem:[%s2701_s17 + $0x28] sm:$0xff]  }
  0x3a   : > { %477 = vperm.xlu1 %2416, %v412_v2   ;;  %1084 = vmatpush.msra.mxu3 %v4497_v28  ;;  %4672 = vst [vmem:[#allocation14_spill] sm:$0xff] %v2850_v54  ;;  %v4448_v55 = vunpack.c.h.bf16 %v2850_v54  ;;  %v4491_v56 = vunpack.c.l.bf16 %v2837_v49  ;;  %v4454_v58 = vunpack.c.l.bf16 %v2840_v50  ;;  %v2866_v60 = vld [vmem:[%s2701_s17 + $0xd8] sm:$0xff]   ;;  %v4506_v61 = vunpack.c.h.bf16 %v2859_v57  ;;  %v2886_v2 = vld [vmem:[%s2701_s17 + $0x90] sm:$0xff]   ;;  %v2896_v5 = vld [vmem:[%s2701_s17 + $0x68] sm:$0xff]  }
  0x3b   : > { %1056 = vmatpush.msra.mxu2 %v4493_v29  ;;  %996 = vmatpush.msra.mxu0 %v4501_v40  ;;  %4673 = vst [vmem:[#allocation15_spill] sm:$0xff] %v2863_v59  ;;  %v4447_v62 = vunpack.c.l.bf16 %v2850_v54  ;;  %v4486_v63 = vunpack.c.h.bf16 %v2863_v59  ;;  %v3113_v40 = vld [vmem:[%s2701_s17 + $0x1b0] sm:$0xff]  }
  0x3c   : > { %1085 = vmatpush.msra.mxu3 %v4492_v30  ;;  %1025 = vmatpush.msra.mxu1 %v4509_v46  ;;  %4674 = vst [vmem:[#allocation16_spill] sm:$0xff] %v2866_v60 }
  0x3d   : > { %1057 = vmatpush.msra.mxu2 %v4487_v31  ;;  %997 = vmatpush.msra.mxu0 %v4499_v45  ;;  %4675 = vst [vmem:[#allocation17_spill] sm:$0xff] %v2886_v2 }
  0x3e   : > { %381 = vperm.xlu0 %2414, %v359_v4   ;;  %1086 = vmatpush.msra.mxu3 %v4482_v34  ;;  %v4445_v4 = vunpack.c.h.bf16 %v2886_v2  ;;  %4694 = vst [vmem:[#allocation36_spill] sm:$0xff] %v3113_v40 }
  0x3f   : > { %1058 = vmatpush.msra.mxu2 %v4480_v38  ;;  %998 = vmatpush.msra.mxu0 %v4495_v51 }
  0x40   : > { %1087 = vmatpush.msra.mxu3 %v4474_v41  ;;  %1026 = vmatpush.msra.mxu1 %v4507_v52 }
  0x41   : > { %423 = vperm.xlu2 %2418, %v413_v8   ;;  %1059 = vmatpush.msra.mxu2 %v4463_v39 }
  0x42   : > { %2419 = vset.pattern.permute.xlu1 %v2564_v1  ;;  %1088 = vmatpush.msra.mxu3 %v4460_v47 }
  0x43   : > { %371 = vperm.xlu1 %2419, %v357_v9   ;;  %1060 = vmatpush.msra.mxu2 %v4457_v43  ;;  %v4444_v9 = vunpack.c.l.bf16 %v2886_v2  ;;  %v2988_v43 = vld [vmem:[%s2701_s17 + $0xc0] sm:$0xff]  }
  0x44   : > { %1089 = vmatpush.msra.mxu3 %v4456_v53  ;;  %999 = vmatpush.msra.mxu0 %v4491_v56  ;;  %v2985_v53 = vld [vmem:[%s2701_s17 + $0x10] sm:$0xff]   ;;  %4685 = vst [vmem:[#allocation27_spill] sm:$0xff] %v2988_v43  ;;  %v4469_v47 = vunpack.c.h.bf16 %v2988_v43 }
  0x45   : > { %1061 = vmatpush.msra.mxu2 %v4452_v48  ;;  %1027 = vmatpush.msra.mxu1 %v4506_v61  ;;  %4684 = vst [vmem:[#allocation26_spill] sm:$0xff] %v2985_v53  ;;  %v4517_v61 = vunpack.c.h.bf16 %v3113_v40 }
  0x46   : > { %366 = vperm.xlu0 %2414, %v356_v7   ;;  %1090 = vmatpush.msra.mxu3 %v4454_v58  ;;  %v4500_v7 = vunpack.c.h.bf16 %v2896_v5 }
  0x47   : > { %1062 = vmatpush.msra.mxu2 %v4448_v55  ;;  %1000 = vmatpush.msra.mxu0 %v4486_v63  ;;  %v2960_v55 = vld [vmem:[%s2701_s17 + $0x80] sm:$0xff]   ;;  %v351_v63 = vld [vmem:[%s3053_s9 + $0xc] sm:$0x7] }
  0x48   : > { %4682 = vst [vmem:[#allocation24_spill] sm:$0xff] %v2960_v55 }
  0x49   : > { %663 = vperm.xlu2 %2418, %v653_v10   ;;  %1063 = vmatpush.msra.mxu2 %v4447_v62  ;;  %v2911_v10 = vld [vmem:[%s2701_s17 + $0x20] sm:$0xff]  }
  0x4a   : > { %4676 = vst [vmem:[#allocation18_spill] sm:$0xff] %v2911_v10 }
  0x4b   : > { %2421 = vset.pattern.permute.xlu1 %v2563_v0  ;;  %1064 = vmatpush.msra.mxu2 %v4445_v4 }
  0x4c   : > { %569 = vperm.xlu1 %2421, %v413_v8  }
  0x4d   : > { %1065 = vmatpush.msra.mxu2 %v4444_v9 }
  0x4e   : > { %2420 = vset.pattern.permute.xlu0 %v2565_v6 }
  0x4f   : > { %481 = vperm.xlu0 %2420, %v413_v8   ;;  %v4446_v8 = vunpack.c.l.bf16 %v2866_v60 }
  0x51   : > { %2423 = vset.pattern.permute.xlu2 %v2565_v6 }
  0x52   : > { %485 = vperm.xlu2 %2423, %v414_v11  }
  0x54   : > { %2422 = vset.pattern.permute.xlu1 %v2564_v1 }
  0x55   : > { %428 = vperm.xlu1 %2422, %v414_v11  }
  0x57   : > { %2424 = vset.pattern.permute.xlu0 %v2563_v0 }
  0x58   : > { %573 = vperm.xlu0 %2424, %v414_v11   ;;  %v2914_v11 = vld [vmem:[%s2701_s17 + $0xd0] sm:$0xff]  }
  0x59   : > { %4677 = vst [vmem:[#allocation19_spill] sm:$0xff] %v2914_v11 }
  0x5a   : > { %2425 = vset.pattern.permute.xlu2 %v2564_v1 }
  0x5b   : > { %433 = vperm.xlu2 %2425, %v415_v12  }
  0x5d   : > { %668 = vperm.xlu1 %2422, %v654_v14   ;;  %v4450_v14 = vunpack.c.h.bf16 %v2914_v11 }
  0x60   : > { %2428 = vset.pattern.permute.xlu0 %v2564_v1 }
  0x61   : > { %396 = vperm.xlu0 %2428, %v362_v13   ;;  %v4496_v13 = vunpack.c.l.bf16 %v2896_v5 }
  0x63   : > { %2427 = vset.pattern.permute.xlu2 %v2563_v0  ;;  %v4505_v0 = vunpack.c.l.bf16 %v2859_v57 }
  0x64   : > { %577 = vperm.xlu2 %2427, %v415_v12  }
  0x65   : > { %2426 = vset.pattern.permute.xlu1 %v2565_v6  ;;  %1028 = vmatpush.msra.mxu1 %v4505_v0  ;;  %v4485_v6 = vunpack.c.l.bf16 %v2863_v59 }
  0x66   : > { %489 = vperm.xlu1 %2426, %v415_v12   ;;  %v4476_v12 = vunpack.c.h.bf16 %v2911_v10 }
  0x67   : > { %1001 = vmatpush.msra.mxu0 %v4485_v6  ;;  %1029 = vmatpush.msra.mxu1 %v4500_v7  ;;  %v3110_v7 = vld [vmem:[%s2701_s17 + $0x170] sm:$0xff]  }
  0x68   : > { %4693 = vst [vmem:[#allocation35_spill] sm:$0xff] %v3110_v7  ;;  %v4516_v0 = vunpack.c.h.bf16 %v3110_v7  ;;  %v4529_v46 = vunpack.c.l.bf16 %v3110_v7 }
  0x69   : > { %1362 = vperm.xlu0 %2428, %v1356_v15   ;;  %v2924_v15 = vld [vmem:[%s2701_s17 + $0x88] sm:$0xff]   ;;  %1002 = vmatpush.msra.mxu0 %v4476_v12  ;;  %v3046_v12 = vld [vmem:[%s2701_s17 + $0x40] sm:$0xff]  }
  0x6a   : > { %4678 = vst [vmem:[#allocation20_spill] sm:$0xff] %v2924_v15  ;;  %1030 = vmatpush.msra.mxu1 %v4496_v13  ;;  %v4455_v9 = vunpack.c.l.bf16 %v2924_v15  ;;  %v4494_v38 = vunpack.c.l.bf16 %v3046_v12 }
  0x6b   : > { %4690 = vst [vmem:[#allocation32_spill] sm:$0xff] %v3046_v12 }
  0x6c   : > { %2430 = vset.pattern.permute.xlu2 %v2564_v1 }
  0x6d   : > { %673 = vperm.xlu2 %2430, %v655_v17   ;;  %v4473_v17 = vunpack.c.l.bf16 %v2911_v10  ;;  %v3304_v10 = vld [vmem:[%s2701_s17 + $0x198] sm:$0xff]  }
  0x6e   : > { %2429 = vset.pattern.permute.xlu1 %v2564_v1  ;;  %v4451_v1 = vunpack.c.h.bf16 %v2866_v60  ;;  %v3245_v60 = vld [vmem:[%s2701_s17 + $0x1e8] sm:$0xff]   ;;  %4720 = vst [vmem:[#allocation50_spill] sm:$0xff] %v3304_v10 }
  0x6f   : > { %401 = vperm.xlu1 %2429, %v363_v18   ;;  %v2933_v18 = vld [vmem:[%s2701_s17 + $0x60] sm:$0xff]   ;;  %1003 = vmatpush.msra.mxu0 %v4473_v17  ;;  %4712 = vst [vmem:[#allocation46_spill] sm:$0xff] %v3245_v60 }
  0x70   : > { %1091 = vmatpush.msra.mxu3 %v4451_v1  ;;  %4679 = vst [vmem:[#allocation21_spill] sm:$0xff] %v2933_v18 }
  0x71   : > { %1377 = vperm.xlu0 %2428, %v1359_v16   ;;  %v4449_v16 = vunpack.c.h.bf16 %v2924_v15 }
  0x72   : > { %1092 = vmatpush.msra.mxu3 %v4446_v8  ;;  %v4481_v8 = vunpack.c.l.bf16 %v2933_v18 }
  0x73   : > { %1066 = vmatpush.msra.mxu2 %v4449_v16  ;;  %v4461_v16 = vunpack.c.h.bf16 %v2960_v55 }
  0x74   : > { %1093 = vmatpush.msra.mxu3 %v4450_v14  ;;  %v2968_v14 = vld [vmem:[%s2701_s17 + $0x58] sm:$0xff]  }
  0x75   : > { %391 = vperm.xlu2 %2430, %v361_v19   ;;  %v4453_v19 = vunpack.c.l.bf16 %v2914_v11  ;;  %1067 = vmatpush.msra.mxu2 %v4455_v9  ;;  %4683 = vst [vmem:[#allocation25_spill] sm:$0xff] %v2968_v14  ;;  %v4465_v9 = vunpack.c.l.bf16 %v2960_v55 }
  0x77   : > { %386 = vperm.xlu1 %2429, %v360_v23   ;;  %v2937_v23 = vld [vmem:[%s2701_s17 + $0x18] sm:$0xff]   ;;  %1094 = vmatpush.msra.mxu3 %v4453_v19  ;;  %v4464_v19 = vunpack.c.h.bf16 %v2968_v14 }
  0x78   : > { %4680 = vst [vmem:[#allocation22_spill] sm:$0xff] %v2937_v23  ;;  %v4458_v4 = vunpack.c.h.bf16 %v2937_v23  ;;  %v4462_v48 = vunpack.c.l.bf16 %v2937_v23  ;;  %1068 = vmatpush.msra.mxu2 %v4461_v16  ;;  %v3002_v16 = vld [vmem:[%s2701_s17 + $0x50] sm:$0xff]  }
  0x79   : > { %4686 = vst [vmem:[#allocation28_spill] sm:$0xff] %v3002_v16  ;;  %v4471_v39 = vunpack.c.h.bf16 %v3002_v16  ;;  %v3296_v23 = vld [vmem:[%s2701_s17 + $0x130] sm:$0xff]  }
  0x7a   : > { %1004 = vmatpush.msra.mxu0 %v4458_v4  ;;  %v4467_v4 = vunpack.c.h.bf16 %v2985_v53  ;;  %1069 = vmatpush.msra.mxu2 %v4465_v9  ;;  %v3018_v9 = vld [vmem:[%s2701_s17 + $0x8] sm:$0xff]  }
  0x7b   : > { %4687 = vst [vmem:[#allocation29_spill] sm:$0xff] %v3018_v9 }
  0x7c   : > { %1005 = vmatpush.msra.mxu0 %v4462_v48  ;;  %v4470_v48 = vunpack.c.l.bf16 %v2985_v53 }
  0x7d   : > { %1372 = vperm.xlu2 %2430, %v1358_v32   ;;  %v2940_v32 = vld [vmem:[%s2701_s17 + $0xc8] sm:$0xff]  }
  0x7e   : > { %4681 = vst [vmem:[#allocation23_spill] sm:$0xff] %v2940_v32  ;;  %v4459_v62 = vunpack.c.h.bf16 %v2940_v32  ;;  %v4466_v58 = vunpack.c.l.bf16 %v2940_v32  ;;  %1006 = vmatpush.msra.mxu0 %v4467_v4  ;;  %v4479_v4 = vunpack.c.l.bf16 %v3002_v16 }
  0x7f   : > { %1367 = vperm.xlu1 %2429, %v1357_v37   ;;  %v4489_v37 = vunpack.c.h.bf16 %v2933_v18 }
  0x80   : > { %1095 = vmatpush.msra.mxu3 %v4459_v62  ;;  %v4468_v62 = vunpack.c.l.bf16 %v2968_v14  ;;  %1007 = vmatpush.msra.mxu0 %v4470_v48  ;;  %v4477_v48 = vunpack.c.l.bf16 %v3018_v9  ;;  %v3299_v14 = vld [vmem:[%s2701_s17 + $0x158] sm:$0xff]  }
  0x81   : > { %1031 = vmatpush.msra.mxu1 %v4489_v37  ;;  %v3080_v37 = vld [vmem:[%s2701_s17 + $0x178] sm:$0xff]   ;;  %4719 = vst [vmem:[#allocation49_spill] sm:$0xff] %v3299_v14  ;;  %v4736_v33 = vunpack.c.l.bf16 %v3299_v14 }
  0x82   : > { %1096 = vmatpush.msra.mxu3 %v4466_v58  ;;  %v4475_v58 = vunpack.c.h.bf16 %v3018_v9  ;;  %4691 = vst [vmem:[#allocation33_spill] sm:$0xff] %v3080_v37 }
  0x83   : > { %1032 = vmatpush.msra.mxu1 %v4481_v8 }
  0x84   : > { %1097 = vmatpush.msra.mxu3 %v4469_v47  ;;  %v3027_v47 = vld [vmem:[%s2701_s17 + $0x48] sm:$0xff]   ;;  %1008 = vmatpush.msra.mxu0 %v4475_v58 }
  0x85   : > { %1033 = vmatpush.msra.mxu1 %v4464_v19  ;;  %v4472_v19 = vunpack.c.l.bf16 %v2988_v43  ;;  %4688 = vst [vmem:[#allocation30_spill] sm:$0xff] %v3027_v47  ;;  %v4484_v41 = vunpack.c.l.bf16 %v3027_v47  ;;  %v3154_v43 = vld [vmem:[%s2701_s17 + $0x168] sm:$0xff]  }
  0x86   : > { %1009 = vmatpush.msra.mxu0 %v4477_v48  ;;  %v4490_v48 = vunpack.c.h.bf16 %v3046_v12  ;;  %4697 = vst [vmem:[#allocation39_spill] sm:$0xff] %v3154_v43 }
  0x87   : > { %1034 = vmatpush.msra.mxu1 %v4468_v62  ;;  %1098 = vmatpush.msra.mxu3 %v4472_v19  ;;  %v3036_v19 = vld [vmem:[%s2701_s17] sm:$0xff]  }
  0x88   : > { %4689 = vst [vmem:[#allocation31_spill] sm:$0xff] %v3036_v19  ;;  %v4483_v17 = vunpack.c.h.bf16 %v3036_v19  ;;  %v4488_v58 = vunpack.c.l.bf16 %v3036_v19 }
  0x89   : > { %1035 = vmatpush.msra.mxu1 %v4471_v39  ;;  %v4478_v39 = vunpack.c.h.bf16 %v3027_v47 }
  0x8a   : > { %v2888_v3 = vpop.permute.xlu2 %565  ;;  %1010 = vmatpush.msra.mxu0 %v4483_v17 }
  0x8b   : > { %1036 = vmatpush.msra.mxu1 %v4479_v4  ;;  %v350_v4 = vld [vmem:[%s3053_s9 + $0x8] sm:$0x7] }
  0x8c   : > { %1011 = vmatpush.msra.mxu0 %v4488_v58 }
  0x8d   : > { %1037 = vmatpush.msra.mxu1 %v4478_v39 }
  0x8f   : > { %1038 = vmatpush.msra.mxu1 %v4484_v41 }
  0x91   : > { %1039 = vmatpush.msra.mxu1 %v4490_v48  ;;  %v3083_v48 = vld [vmem:[%s2701_s17 + $0x1b8] sm:$0xff]  }
  0x92   : > { %4692 = vst [vmem:[#allocation34_spill] sm:$0xff] %v3083_v48 }
  0x93   : > { %v2970_v1 = vpop.permute.xlu2 %658  ;;  %1040 = vmatpush.msra.mxu1 %v4494_v38  ;;  %v4510_v38 = vunpack.c.l.bf16 %v3080_v37 }
  0x9b   : > { %v3024_v62 = vpop.permute.xlu2 %423 }
  0xa3   : > { %v3060_v39 = vpop.permute.xlu1 %418  ;;  %v3068_v34 = vpop.permute.xlu2 %663 }
  0xa8   : > { %v377_v8 = vpop.permute.xlu0 %376 }
  0xa9   : > { %v406_v17 = vmul.f32 %v377_v8, %v350_v4  ;;  %v4503_v4 = vunpack.c.h.bf16 %v3080_v37  ;;  %v4504_v8 = vunpack.c.h.bf16 %v3083_v48 }
  0xab   : > { %v3072_v41 = vperm.slane %v406_v17, 0  ;;  %v3074_v6 = vperm.slane %v406_v17, 1  ;;  %v3077_v31 = vperm.slane %v406_v17, 2  ;;  %1141 = vmatpush.msrb.mxu1 %v4503_v4  ;;  %1170 = vmatpush.msrb.mxu2 %v4504_v8 }
  0xac   : > { %v3085_v30 = vpop.permute.xlu1 %477  ;;  %v3087_v29 = vpop.permute.xlu2 %485 }
  0xad   : > { %v452_v17 = vmul.f32 %v3072_v41, %v3060_v39  ;;  %v508_v51 = vmul.f32 %v3074_v6, %v3085_v30  ;;  %v596_v45 = vmul.f32 %v3077_v31, %v2888_v3  ;;  %1142 = vmatpush.msrb.mxu1 %v4510_v38 }
  0xaf   : > { %v540_v25 = vadd.f32 %v508_v51, %v452_v17  ;;  %v3124_v51 = vld [vmem:[%s2701_s17 + $0x1f8] sm:$0xff]   ;;  %v348_v17 = vld [vmem:[%s3053_s9] sm:$0x7]  ;;  %1143 = vmatpush.msrb.mxu1 %v4516_v0  ;;  %v3157_v0 = vld [vmem:[%s2701_s17 + $0x1a8] sm:$0xff]  }
  0xb0   : > { %v382_v58 = vpop.permute.xlu0 %381  ;;  %4695 = vst [vmem:[#allocation37_spill] sm:$0xff] %v3124_v51  ;;  %v4518_v52 = vunpack.c.h.bf16 %v3124_v51  ;;  %v4701_v12 = vunpack.c.l.bf16 %v3124_v51  ;;  %v3223_v51 = vld [vmem:[%s2701_s17 + $0x1a0] sm:$0xff]  }
  0xb1   : > { %v407_v56 = vmul.f32 %v382_v58, %v351_v63  ;;  %v4515_v58 = vunpack.c.l.bf16 %v3083_v48  ;;  %v628_v8 = vadd.f32 %v596_v45, %v540_v25  ;;  %v349_v25 = vld [vmem:[%s3053_s9 + $0x4] sm:$0x7]  ;;  %4698 = vst [vmem:[#allocation40_spill] sm:$0xff] %v3157_v0  ;;  %1144 = vmatpush.msrb.mxu1 %v4529_v46  ;;  %v3173_v48 = vld [vmem:[%s2701_s17 + $0x1f0] sm:$0xff]  }
  0xb2   : > { %1199 = vmatpush.msrb.mxu3 %v4518_v52  ;;  %4700 = vst [vmem:[#allocation41_spill] sm:$0xff] %v3173_v48  ;;  %v4713_v50 = vunpack.c.l.bf16 %v3173_v48 }
  0xb3   : > { %v3097_v63 = vperm.slane %v407_v56, 0  ;;  %v3099_v13 = vperm.slane %v407_v56, 1  ;;  %v3101_v28 = vperm.slane %v407_v56, 2  ;;  %1171 = vmatpush.msrb.mxu2 %v4515_v58  ;;  %v3137_v45 = vadd.f32 %v2970_v1, %v628_v8  ;;  %4709 = vst [vmem:[#allocation45_spill] sm:$0xff] %v3223_v51 }
  0xb4   : > { %v3151_v8 = vmul.f32 %v3074_v6, %v3087_v29  ;;  %1200 = vmatpush.msrb.mxu3 %v4701_v12 }
  0xb5   : > { %v456_v26 = vmul.f32 %v3097_v63, %v3060_v39  ;;  %v512_v56 = vmul.f32 %v3099_v13, %v3085_v30  ;;  %v600_v4 = vmul.f32 %v3101_v28, %v2888_v3  ;;  %4696 = vst [vmem:[#allocation38_spill] sm:$0xff] %v3137_v45  ;;  %1172 = vmatpush.msrb.mxu2 %v4517_v61  ;;  %v372_v38 = vpop.permute.xlu1 %371  ;;  %v3159_v61 = vpop.permute.xlu2 %433  ;;  %v4702_v46 = vmax.f32 %v3137_v45, 0.0 }
  0xb6   : > { %v405_v15 = vmul.f32 %v372_v38, %v349_v25  ;;  %v4704_v45 = vunpack.c.h.bf16 %v3157_v0 }
  0xb7   : > { %v544_v24 = vadd.f32 %v512_v56, %v456_v26  ;;  %v3145_v56 = vmul.f32 %v3072_v41, %v3024_v62  ;;  %1070 = vmatmul.f32.vlgmr.msra.gmra.mxu2 %v4702_v46 }
  0xb8   : > { %v367_v55 = vpop.permute.xlu0 %366  ;;  %v3193_v25 = vperm.slane %v405_v15, 0  ;;  %v3195_v12 = vperm.slane %v405_v15, 1  ;;  %v3197_v46 = vperm.slane %v405_v15, 2  ;;  %v4705_v15 = vunpack.c.h.bf16 %v3173_v48 }
  0xb9   : > { %v404_v58 = vmul.f32 %v367_v55, %v348_v17  ;;  %v632_v26 = vadd.f32 %v600_v4, %v544_v24  ;;  %v3164_v55 = vmul.f32 %v3097_v63, %v3024_v62  ;;  %v4699_v4 = vunpack.c.l.bf16 %v3113_v40 }
  0xba   : > { %v4531_v17 = vunpack.c.h.bf16 %v3154_v43  ;;  %1201 = vmatpush.msrb.mxu3 %v4705_v15  ;;  %v4706_v40 = vunpack.c.l.bf16 %v3154_v43  ;;  %v448_v7 = vmul.f32 %v3193_v25, %v3060_v39  ;;  %v504_v19 = vmul.f32 %v3195_v12, %v3085_v30 }
  0xbb   : > { %1173 = vmatpush.msrb.mxu2 %v4699_v4  ;;  %v3175_v37 = vperm.slane %v404_v58, 0  ;;  %v3177_v32 = vperm.slane %v404_v58, 1  ;;  %v3179_v24 = vperm.slane %v404_v58, 2  ;;  %v3186_v4 = vadd.f32 %v2970_v1, %v632_v26 }
  0xbc   : > { %1145 = vmatpush.msrb.mxu1 %v4531_v17  ;;  %v3210_v58 = vmul.f32 %v3099_v13, %v3087_v29  ;;  %v3220_v17 = vld [vmem:[%s2701_s17 + $0x160] sm:$0xff]   ;;  %v592_v11 = vmul.f32 %v3197_v46, %v2888_v3  ;;  %v449_v47 = vmul.f32 %v3193_v25, %v3024_v62  ;;  %v536_v16 = vadd.f32 %v504_v19, %v448_v7 }
  0xbd   : > { %4703 = vst [vmem:[#allocation42_spill] sm:$0xff] %v3186_v4  ;;  %v444_v26 = vmul.f32 %v3175_v37, %v3060_v39  ;;  %1174 = vmatpush.msrb.mxu2 %v4704_v45  ;;  %v500_v52 = vmul.f32 %v3177_v32, %v3085_v30  ;;  %v588_v38 = vmul.f32 %v3179_v24, %v2888_v3  ;;  %v3217_v45 = vld [vmem:[%s2701_s17 + $0x138] sm:$0xff]   ;;  %v4711_v43 = vmax.f32 %v3186_v4, 0.0 }
  0xbe   : > { %1146 = vmatpush.msrb.mxu1 %v4706_v40  ;;  %4707 = vst [vmem:[#allocation43_spill] sm:$0xff] %v3217_v45  ;;  %v445_v15 = vmul.f32 %v3175_v37, %v3024_v62  ;;  %v4710_v40 = vunpack.c.l.bf16 %v3157_v0  ;;  %v3241_v9 = vmul.f32 %v3177_v32, %v3087_v29  ;;  %1202 = vmatpush.msrb.mxu3 %v4713_v50  ;;  %v3260_v7 = vpop.permute.xlu1 %569  ;;  %v3262_v19 = vpop.permute.xlu2 %577 }
  0xbf   : > { %4708 = vst [vmem:[#allocation44_spill] sm:$0xff] %v3220_v17  ;;  %1099 = vmatmul.f32.vlgmr.msra.gmra.mxu3 %v4711_v43  ;;  %v532_v2 = vadd.f32 %v500_v52, %v444_v26  ;;  %v624_v4 = vadd.f32 %v592_v11, %v536_v16  ;;  %v4574_v43 = vunpack.c.h.bf16 %v3245_v60  ;;  %v597_v16 = vmul.f32 %v3077_v31, %v3260_v7 }
  0xc0   : > { %1175 = vmatpush.msrb.mxu2 %v4710_v40  ;;  %v4567_v40 = vunpack.c.h.bf16 %v3217_v45  ;;  %v601_v42 = vmul.f32 %v3101_v28, %v3260_v7 }
  0xc1   : > { %v3247_v53 = vpop.permute.xlu0 %481  ;;  %v620_v52 = vadd.f32 %v588_v38, %v532_v2  ;;  %v4714_v38 = vunpack.c.h.bf16 %v3220_v17  ;;  %1203 = vmatpush.msrb.mxu3 %v4574_v43  ;;  %v4580_v43 = vunpack.c.l.bf16 %v3220_v17  ;;  %v353_v17 = vld [vmem:[%s3053_s9 + $0x14] sm:$0x7] }
  0xc2   : > { %v509_v26 = vmul.f32 %v3074_v6, %v3247_v53  ;;  %v513_v0 = vmul.f32 %v3099_v13, %v3247_v53  ;;  %v501_v54 = vmul.f32 %v3177_v32, %v3247_v53  ;;  %v505_v2 = vmul.f32 %v3195_v12, %v3247_v53  ;;  %1112 = vmatpush.msrb.mxu0 %v4567_v40 }
  0xc3   : > { %1147 = vmatpush.msrb.mxu1 %v4714_v38  ;;  %v3273_v50 = vadd.f32 %v2970_v1, %v620_v52  ;;  %v4716_v40 = vunpack.c.h.bf16 %v3223_v51  ;;  %v3282_v38 = vadd.f32 %v2970_v1, %v624_v4  ;;  %v593_v4 = vmul.f32 %v3197_v46, %v3260_v7 }
  0xc4   : > { %v541_v11 = vadd.f32 %v509_v26, %v3145_v56  ;;  %v545_v48 = vadd.f32 %v513_v0, %v3164_v55  ;;  %v533_v52 = vadd.f32 %v501_v54, %v445_v15  ;;  %v589_v56 = vmul.f32 %v3179_v24, %v3260_v7 }
  0xc5   : > { %4715 = vst [vmem:[#allocation47_spill] sm:$0xff] %v3273_v50  ;;  %1176 = vmatpush.msrb.mxu2 %v4716_v40  ;;  %v4578_v0 = vmax.f32 %v3273_v50, 0.0  ;;  %v537_v26 = vadd.f32 %v505_v2, %v449_v47  ;;  %v4718_v40 = vunpack.c.l.bf16 %v3217_v45  ;;  %v4577_v54 = vmax.f32 %v3282_v38, 0.0  ;;  %1148 = vmatpush.msrb.mxu1 %v4580_v43 }
  0xc6   : > { %4717 = vst [vmem:[#allocation48_spill] sm:$0xff] %v3282_v38  ;;  %v629_v55 = vadd.f32 %v597_v16, %v541_v11  ;;  %v633_v15 = vadd.f32 %v601_v42, %v545_v48  ;;  %v621_v36 = vadd.f32 %v589_v56, %v533_v52  ;;  %v3307_v11 = vld [vmem:[%s2701_s17 + $0x1e0] sm:$0xff]   ;;  %v4579_v16 = vunpack.c.l.bf16 %v3223_v51  ;;  %v3376_v51 = vld [vmem:[%s2701_s17 + $0x150] sm:$0xff]  }
  0xc7   : > { %1113 = vmatpush.msrb.mxu0 %v4718_v40  ;;  %4721 = vst [vmem:[#allocation51_spill] sm:$0xff] %v3307_v11  ;;  %v625_v2 = vadd.f32 %v593_v4, %v537_v26  ;;  %v4581_v40 = vunpack.c.l.bf16 %v3245_v60  ;;  %1041 = vmatmul.f32.vlgmr.msra.gmra.mxu1 %v4577_v54  ;;  %v4582_v52 = vunpack.c.h.bf16 %v3296_v23  ;;  %v3351_v43 = vpop.permute.xlu1 %428  ;;  %v3382_v54 = vld [vmem:[%s2701_s17 + $0x1d8] sm:$0xff]  }
  0xc8   : > { %1012 = vmatmul.f32.vlgmr.msra.gmra.mxu0 %v4578_v0  ;;  %v3312_v47 = vadd.f32 %v3068_v34, %v629_v55  ;;  %v3319_v42 = vadd.f32 %v3068_v34, %v633_v15  ;;  %v3322_v48 = vadd.f32 %v3068_v34, %v621_v36  ;;  %1177 = vmatpush.msrb.mxu2 %v4579_v16  ;;  %v3349_v16 = vld [vmem:[%s2701_s17 + $0x128] sm:$0xff]   ;;  %v3355_v0 = vpop.permute.xlu2 %673 }
  0xc9   : > { %v3330_v4 = vadd.f32 %v3068_v34, %v625_v2  ;;  %v506_v2 = vmul.f32 %v3195_v12, %v3087_v29  ;;  %1204 = vmatpush.msrb.mxu3 %v4581_v40  ;;  %1114 = vmatpush.msrb.mxu0 %v4582_v52  ;;  %4726 = vst [vmem:[#allocation56_spill] sm:$0xff] %v3349_v16  ;;  %v4727_v52 = vunpack.c.h.bf16 %v3299_v14 }
  0xca   : > { %4722 = vst [vmem:[#allocation52_spill] sm:$0xff] %v3312_v47  ;;  %v3326_v55 = vpop.permute.xlu0 %573  ;;  %v4584_v26 = vmax.f32 %v3312_v47, 0.0  ;;  %v4728_v38 = vmax.f32 %v3319_v42, 0.0  ;;  %v450_v15 = vmul.f32 %v3193_v25, %v3351_v43  ;;  %v454_v47 = vmul.f32 %v3072_v41, %v3351_v43 }
  0xcb   : > { %4723 = vst [vmem:[#allocation53_spill] sm:$0xff] %v3319_v42  ;;  %v590_v56 = vmul.f32 %v3179_v24, %v3326_v55  ;;  %v594_v40 = vmul.f32 %v3197_v46, %v3326_v55  ;;  %v598_v36 = vmul.f32 %v3077_v31, %v3326_v55  ;;  %1149 = vmatpush.msrb.mxu1 %v4727_v52  ;;  %v3379_v52 = vld [vmem:[%s2701_s17 + $0x190] sm:$0xff]   ;;  %v4733_v42 = vunpack.c.h.bf16 %v3307_v11 }
  0xcc   : > { %4724 = vst [vmem:[#allocation54_spill] sm:$0xff] %v3322_v48  ;;  %1073 = vmatmul.f32.gmra.mxu2 %v4584_v26  ;;  %1102 = vmatmul.f32.gmra.mxu3 %v4728_v38  ;;  %v446_v26 = vmul.f32 %v3175_v37, %v3351_v43  ;;  %v458_v50 = vmul.f32 %v3097_v63, %v3351_v43  ;;  %v4732_v38 = vunpack.c.h.bf16 %v3304_v10  ;;  %v4735_v60 = vmax.f32 %v3322_v48, 0.0 }
  0xcd   : > { %4725 = vst [vmem:[#allocation55_spill] sm:$0xff] %v3330_v4  ;;  %1205 = vmatpush.msrb.mxu3 %v4733_v42  ;;  %v538_v18 = vadd.f32 %v506_v2, %v450_v15  ;;  %v542_v27 = vadd.f32 %v3151_v8, %v454_v47  ;;  %v4734_v42 = vunpack.c.l.bf16 %v3296_v23  ;;  %v602_v45 = vmul.f32 %v3101_v28, %v3326_v55 }
  0xce   : > { %4729 = vst [vmem:[#allocation57_spill] sm:$0xff] %v3376_v51  ;;  %1178 = vmatpush.msrb.mxu2 %v4732_v38  ;;  %v534_v59 = vadd.f32 %v3241_v9, %v446_v26  ;;  %v546_v38 = vadd.f32 %v3210_v58, %v458_v50  ;;  %1150 = vmatpush.msrb.mxu1 %v4736_v33  ;;  %v4605_v9 = vunpack.c.h.bf16 %v3376_v51  ;;  %v4737_v58 = vmax.f32 %v3330_v4, 0.0  ;;  %v354_v50 = vld [vmem:[%s3053_s9 + $0x18] sm:$0x7] }
  0xcf   : > { %4730 = vst [vmem:[#allocation58_spill] sm:$0xff] %v3379_v52  ;;  %1115 = vmatpush.msrb.mxu0 %v4734_v42  ;;  %v626_v15 = vadd.f32 %v594_v40, %v538_v18  ;;  %v630_v2 = vadd.f32 %v598_v36, %v542_v27  ;;  %v3411_v42 = vld [vmem:[%s2701_s17 + $0x120] sm:$0xff]   ;;  %v4739_v33 = vunpack.c.l.bf16 %v3304_v10  ;;  %v4740_v26 = vunpack.c.l.bf16 %v3307_v11 }
  0xd0   : > { %4731 = vst [vmem:[#allocation59_spill] sm:$0xff] %v3382_v54  ;;  %1015 = vmatmul.f32.gmra.mxu0 %v4735_v60  ;;  %1044 = vmatmul.f32.gmra.mxu1 %v4737_v58  ;;  %v622_v47 = vadd.f32 %v590_v56, %v534_v59  ;;  %v4608_v60 = vunpack.c.l.bf16 %v3349_v16  ;;  %v634_v48 = vadd.f32 %v602_v45, %v546_v38  ;;  %v4606_v8 = vunpack.c.l.bf16 %v3376_v51  ;;  %v3441_v38 = vpop.permute.xlu1 %668  ;;  %v3514_v51 = vld [vmem:[%s2701_s17 + $0x180] sm:$0xff]  }
  0xd1   : > { %4738 = vst [vmem:[#allocation60_spill] sm:$0xff] %v3411_v42  ;;  %1179 = vmatpush.msrb.mxu2 %v4739_v33  ;;  %1206 = vmatpush.msrb.mxu3 %v4740_v26  ;;  %v4607_v58 = vunpack.c.l.bf16 %v3379_v52  ;;  %v3422_v59 = vmul.f32 %v3175_v37, %v3159_v61  ;;  %v4741_v18 = vunpack.c.h.bf16 %v3349_v16  ;;  %v3430_v45 = vmul.f32 %v3179_v24, %v3262_v19  ;;  %v392_v26 = vpop.permute.xlu2 %391 }
  0xd2   : > { %1151 = vmatpush.msrb.mxu1 %v4605_v9  ;;  %v3434_v40 = vmul.f32 %v3193_v25, %v3159_v61  ;;  %v3438_v56 = vmul.f32 %v3197_v46, %v3262_v19  ;;  %v4616_v37 = vunpack.c.l.bf16 %v3382_v54  ;;  %v4742_v33 = vunpack.c.h.bf16 %v3379_v52 }
  0xd3   : > { %v397_v27 = vpop.permute.xlu0 %396  ;;  %1116 = vmatpush.msrb.mxu0 %v4741_v18  ;;  %v4743_v24 = vunpack.c.h.bf16 %v3382_v54  ;;  %v3449_v25 = vmul.f32 %v3072_v41, %v3159_v61  ;;  %v3453_v46 = vmul.f32 %v3077_v31, %v3262_v19  ;;  %v3457_v18 = vadd.f32 %v3441_v38, %v622_v47 }
  0xd4   : > { %v410_v36 = vmul.f32 %v397_v27, %v354_v50  ;;  %1180 = vmatpush.msrb.mxu2 %v4742_v33  ;;  %v4617_v50 = vunpack.c.h.bf16 %v3411_v42  ;;  %v409_v27 = vmul.f32 %v392_v26, %v353_v17  ;;  %v3460_v33 = vadd.f32 %v3441_v38, %v626_v15  ;;  %1152 = vmatpush.msrb.mxu1 %v4606_v8  ;;  %v3483_v15 = vld [vmem:[%s2701_s17 + $0x148] sm:$0xff]   ;;  %v3489_v26 = vld [vmem:[%s2701_s17 + $0x1d0] sm:$0xff]  }
  0xd5   : > { %1207 = vmatpush.msrb.mxu3 %v4743_v24  ;;  %4744 = vst [vmem:[#allocation61_spill] sm:$0xff] %v3457_v18  ;;  %v3463_v24 = vadd.f32 %v3441_v38, %v630_v2  ;;  %1117 = vmatpush.msrb.mxu0 %v4608_v60  ;;  %v3472_v17 = vadd.f32 %v3441_v38, %v634_v48  ;;  %v3486_v2 = vld [vmem:[%s2701_s17 + $0x188] sm:$0xff]   ;;  %v3506_v60 = vld [vmem:[%s2701_s17 + $0x140] sm:$0xff]   ;;  %v4753_v11 = vunpack.c.h.bf16 %v3483_v15  ;;  %v4760_v14 = vunpack.c.l.bf16 %v3489_v26 }
  0xd6   : > { %4745 = vst [vmem:[#allocation62_spill] sm:$0xff] %v3460_v33  ;;  %v3467_v41 = vperm.slane %v410_v36, 0  ;;  %v3469_v31 = vperm.slane %v410_v36, 1  ;;  %1181 = vmatpush.msrb.mxu2 %v4607_v58  ;;  %v3480_v47 = vmul.f32 %v3097_v63, %v3159_v61  ;;  %v3491_v48 = vperm.slane %v410_v36, 2  ;;  %v3503_v63 = vld [vmem:[%s2701_s17 + $0x118] sm:$0xff]   ;;  %v3517_v58 = vld [vmem:[%s2701_s17 + $0x1c8] sm:$0xff]  }
  0xd7   : > { %4746 = vst [vmem:[#allocation63_spill] sm:$0xff] %v3463_v24  ;;  %v3493_v9 = vperm.slane %v409_v27, 0  ;;  %v3495_v8 = vperm.slane %v409_v27, 1  ;;  %1208 = vmatpush.msrb.mxu3 %v4616_v37  ;;  %1118 = vmatpush.msrb.mxu0 %v4617_v50  ;;  %v3508_v4 = vperm.slane %v409_v27, 2  ;;  %v4623_v36 = vmax.f32 %v3460_v33, 0.0  ;;  %v3576_v33 = vld [vmem:[%s2701_s17 + $0x110] sm:$0xff]  }
  0xd8   : > { %4747 = vst [vmem:[#allocation64_spill] sm:$0xff] %v3472_v17  ;;  %v4624_v52 = vmax.f32 %v3463_v24, 0.0  ;;  %v4751_v37 = vmax.f32 %v3457_v18, 0.0  ;;  %v603_v10 = vmul.f32 %v3101_v28, %v3262_v19  ;;  %v4752_v54 = vmax.f32 %v3472_v17, 0.0  ;;  %1153 = vmatpush.msrb.mxu1 %v4753_v11  ;;  %v3552_v27 = vpop.permute.xlu1 %489 }
  0xd9   : > { %4748 = vst [vmem:[#allocation65_spill] sm:$0xff] %v3483_v15  ;;  %1047 = vmatmul.f32.gmra.mxu1 %v4623_v36  ;;  %v4754_v18 = vunpack.c.h.bf16 %v3486_v2  ;;  %v464_v11 = vmul.f32 %v3493_v9, %v3060_v39  ;;  %v4756_v28 = vunpack.c.l.bf16 %v3411_v42  ;;  %v468_v50 = vmul.f32 %v3467_v41, %v3060_v39 }
  0xda   : > { %4749 = vst [vmem:[#allocation66_spill] sm:$0xff] %v3486_v2  ;;  %1018 = vmatmul.f32.gmra.mxu0 %v4751_v37  ;;  %1076 = vmatmul.f32.gmra.mxu2 %v4624_v52  ;;  %v4755_v37 = vunpack.c.h.bf16 %v3489_v26  ;;  %v520_v52 = vmul.f32 %v3495_v8, %v3085_v30  ;;  %v524_v36 = vmul.f32 %v3469_v31, %v3085_v30  ;;  %v4758_v24 = vunpack.c.l.bf16 %v3486_v2 }
  0xdb   : > { %4750 = vst [vmem:[#allocation67_spill] sm:$0xff] %v3489_v26  ;;  %1105 = vmatmul.f32.gmra.mxu3 %v4752_v54  ;;  %1182 = vmatpush.msrb.mxu2 %v4754_v18  ;;  %v4757_v18 = vunpack.c.l.bf16 %v3483_v15  ;;  %v608_v54 = vmul.f32 %v3508_v4, %v2888_v3  ;;  %v503_v17 = vmul.f32 %v3177_v32, %v3552_v27  ;;  %v3579_v15 = vld [vmem:[%s2701_s17 + $0x1c0] sm:$0xff]   ;;  %v4761_v32 = vunpack.c.h.bf16 %v3503_v63 }
  0xdc   : > { %1209 = vmatpush.msrb.mxu3 %v4755_v37  ;;  %1119 = vmatpush.msrb.mxu0 %v4756_v28  ;;  %v507_v28 = vmul.f32 %v3195_v12, %v3552_v27  ;;  %v515_v37 = vmul.f32 %v3099_v13, %v3552_v27  ;;  %4759 = vst [vmem:[#allocation68_spill] sm:$0xff] %v3579_v15  ;;  %v4641_v13 = vunpack.c.l.bf16 %v3517_v58 }
  0xdd   : > { %1154 = vmatpush.msrb.mxu1 %v4757_v18  ;;  %v511_v18 = vmul.f32 %v3074_v6, %v3552_v27  ;;  %1183 = vmatpush.msrb.mxu2 %v4758_v24  ;;  %v552_v12 = vadd.f32 %v520_v52, %v464_v11  ;;  %v556_v42 = vadd.f32 %v524_v36, %v468_v50  ;;  %v4763_v52 = vunpack.c.h.bf16 %v3514_v51 }
  0xde   : > { %1210 = vmatpush.msrb.mxu3 %v4760_v14  ;;  %1120 = vmatpush.msrb.mxu0 %v4761_v32  ;;  %v612_v6 = vmul.f32 %v3491_v48, %v2888_v3  ;;  %v535_v2 = vadd.f32 %v503_v17, %v3422_v59  ;;  %v539_v24 = vadd.f32 %v507_v28, %v3434_v40  ;;  %v4762_v14 = vunpack.c.h.bf16 %v3506_v60 }
  0xdf   : > { %v543_v16 = vadd.f32 %v511_v18, %v3449_v25  ;;  %v547_v26 = vadd.f32 %v515_v37, %v3480_v47  ;;  %1184 = vmatpush.msrb.mxu2 %v4763_v52  ;;  %v4764_v50 = vunpack.c.h.bf16 %v3517_v58  ;;  %v640_v36 = vadd.f32 %v608_v54, %v552_v12  ;;  %v3606_v18 = vld [vmem:[%s2701_s17 + $0x108] sm:$0xff]  }
  0xe0   : > { %1155 = vmatpush.msrb.mxu1 %v4762_v14  ;;  %v644_v11 = vadd.f32 %v612_v6, %v556_v42  ;;  %v4645_v59 = vunpack.c.h.bf16 %v3576_v33  ;;  %v4640_v40 = vunpack.c.h.bf16 %v3579_v15  ;;  %v623_v25 = vadd.f32 %v3430_v45, %v535_v2 }
  0xe1   : > { %1211 = vmatpush.msrb.mxu3 %v4764_v50  ;;  %v627_v17 = vadd.f32 %v3438_v56, %v539_v24  ;;  %v631_v47 = vadd.f32 %v3453_v46, %v543_v16  ;;  %v635_v37 = vadd.f32 %v603_v10, %v547_v26  ;;  %v4765_v28 = vunpack.c.l.bf16 %v3503_v63  ;;  %v355_v56 = vld [vmem:[%s3053_s9 + $0x1c] sm:$0x7]  ;;  %v402_v52 = vpop.permute.xlu1 %401 }
  0xe2   : > { %v4766_v32 = vunpack.c.l.bf16 %v3506_v60  ;;  %v4767_v42 = vunpack.c.l.bf16 %v3514_v51  ;;  %v3613_v54 = vadd.f32 %v2970_v1, %v640_v36  ;;  %v4644_v45 = vunpack.c.l.bf16 %v3576_v33 }
  0xe3   : > { %1121 = vmatpush.msrb.mxu0 %v4765_v28  ;;  %v3618_v16 = vadd.f32 %v3355_v0, %v623_v25  ;;  %v3621_v10 = vadd.f32 %v3355_v0, %v627_v17  ;;  %v3624_v46 = vadd.f32 %v3355_v0, %v631_v47  ;;  %v3627_v2 = vadd.f32 %v3355_v0, %v635_v37 }
  0xe4   : > { %1156 = vmatpush.msrb.mxu1 %v4766_v32  ;;  %1185 = vmatpush.msrb.mxu2 %v4767_v42  ;;  %v3632_v26 = vadd.f32 %v2970_v1, %v644_v11  ;;  %v4648_v12 = vunpack.c.l.bf16 %v3579_v15  ;;  %v4649_v6 = vunpack.c.h.bf16 %v3606_v18  ;;  %v465_v24 = vmul.f32 %v3493_v9, %v3024_v62  ;;  %v3658_v42 = vld [vmem:[%s2701_s17 + $0x100] sm:$0xff]  }
  0xe5   : > { %4768 = vst [vmem:[#allocation69_spill] sm:$0xff] %v3618_v16  ;;  %1212 = vmatpush.msrb.mxu3 %v4641_v13  ;;  %1122 = vmatpush.msrb.mxu0 %v4645_v59  ;;  %v4772_v14 = vunpack.c.h.bf16 %v2828_v44  ;;  %v4642_v50 = vmax.f32 %v3618_v16, 0.0  ;;  %v4643_v36 = vmax.f32 %v3621_v10, 0.0  ;;  %v4646_v11 = vmax.f32 %v3624_v46, 0.0 }
  0xe6   : > { %4769 = vst [vmem:[#allocation70_spill] sm:$0xff] %v3621_v10  ;;  %v4647_v25 = vmax.f32 %v3627_v2, 0.0  ;;  %v4773_v17 = vunpack.c.h.bf16 %v2760_v20  ;;  %v411_v47 = vmul.f32 %v402_v52, %v355_v56  ;;  %v521_v28 = vmul.f32 %v3495_v8, %v3247_v53 }
  0xe7   : > { %4770 = vst [vmem:[#allocation71_spill] sm:$0xff] %v3624_v46  ;;  %1513 = vmatpush.msra.mxu1 %v4772_v14  ;;  %1213 = vmatpush.msrb.mxu3 %v4640_v40  ;;  %v469_v32 = vmul.f32 %v3467_v41, %v3024_v62  ;;  %v4652_v56 = vunpack.c.l.bf16 %v3606_v18  ;;  %v609_v14 = vmul.f32 %v3508_v4, %v3260_v7 }
  0xe8   : > { %4771 = vst [vmem:[#allocation72_spill] sm:$0xff] %v3627_v2  ;;  %1533 = vmatpush.msra.mxu2 %v4773_v17  ;;  %1123 = vmatpush.msrb.mxu0 %v4644_v45  ;;  %v525_v52 = vmul.f32 %v3469_v31, %v3247_v53  ;;  %v613_v17 = vmul.f32 %v3491_v48, %v3260_v7  ;;  %v3671_v40 = vperm.slane %v411_v47, 0  ;;  %v3673_v13 = vperm.slane %v411_v47, 1 }
  0xe9   : > { %1021 = vmatmul.f32.gmra.mxu0 %v4642_v50  ;;  %1050 = vmatmul.f32.gmra.mxu1 %v4643_v36  ;;  %v3675_v50 = vperm.slane %v411_v47, 2  ;;  %v553_v36 = vadd.f32 %v521_v28, %v465_v24  ;;  %v466_v47 = vmul.f32 %v3493_v9, %v3351_v43  ;;  %v522_v37 = vmul.f32 %v3495_v8, %v3087_v29  ;;  %v387_v46 = vpop.permute.xlu1 %386 }
  0xea   : > { %1079 = vmatmul.f32.gmra.mxu2 %v4646_v11  ;;  %1108 = vmatmul.f32.gmra.mxu3 %v4647_v25  ;;  %v557_v45 = vadd.f32 %v525_v52, %v469_v32  ;;  %v472_v11 = vmul.f32 %v3671_v40, %v3060_v39  ;;  %v528_v24 = vmul.f32 %v3673_v13, %v3085_v30  ;;  %v352_v32 = vld [vmem:[%s3053_s9 + $0x10] sm:$0x7]  ;;  %v4775_v25 = vunpack.c.h.bf16 %v2859_v57 }
  0xeb   : > { %1214 = vmatpush.msrb.mxu3 %v4648_v12  ;;  %1124 = vmatpush.msrb.mxu0 %v4649_v6  ;;  %v641_v28 = vadd.f32 %v609_v14, %v553_v36  ;;  %v4774_v12 = vunpack.c.l.bf16 %v2828_v44  ;;  %v616_v52 = vmul.f32 %v3675_v50, %v2888_v3  ;;  %v473_v59 = vmul.f32 %v3671_v40, %v3024_v62 }
  0xec   : > { %v645_v6 = vadd.f32 %v613_v17, %v557_v45  ;;  %v529_v2 = vmul.f32 %v3673_v13, %v3247_v53  ;;  %v560_v36 = vadd.f32 %v528_v24, %v472_v11  ;;  %v617_v14 = vmul.f32 %v3675_v50, %v3260_v7 }
  0xed   : > { %1514 = vmatpush.msra.mxu1 %v4774_v12  ;;  %1125 = vmatpush.msrb.mxu0 %v4652_v56  ;;  %v554_v44 = vadd.f32 %v522_v37, %v466_v47  ;;  %v610_v12 = vmul.f32 %v3508_v4, %v3326_v55  ;;  %v3713_v45 = vadd.f32 %v3068_v34, %v641_v28  ;;  %v4776_v17 = vunpack.c.h.bf16 %v3658_v42 }
  0xee   : > { %v561_v56 = vadd.f32 %v529_v2, %v473_v59  ;;  %v470_v11 = vmul.f32 %v3467_v41, %v3351_v43  ;;  %v526_v37 = vmul.f32 %v3469_v31, %v3087_v29  ;;  %v408_v47 = vmul.f32 %v387_v46, %v352_v32 }
  0xef   : > { %1515 = vmatpush.msra.mxu1 %v4775_v25  ;;  %1126 = vmatpush.msrb.mxu0 %v4776_v17  ;;  %v732_v24 = vmax.f32 %v3632_v26, 0.0  ;;  %v648_v10 = vadd.f32 %v616_v52, %v560_v36  ;;  %v642_v16 = vadd.f32 %v610_v12, %v554_v44  ;;  %v4777_v25 = vunpack.c.l.bf16 %v2859_v57 }
  0xf0   : > { %v4778_v28 = vunpack.c.h.bf16 %v2763_v21  ;;  %v4779_v17 = vmax.f32 %v3613_v54, 0.0  ;;  %v4780_v59 = vunpack.c.l.bf16 %v3658_v42  ;;  %v649_v2 = vadd.f32 %v617_v14, %v561_v56 }
  0xf1   : > { %1516 = vmatpush.msra.mxu1 %v4777_v25  ;;  %v558_v15 = vadd.f32 %v526_v37, %v470_v11  ;;  %v614_v46 = vmul.f32 %v3491_v48, %v3326_v55  ;;  %v3732_v32 = vperm.slane %v408_v47, 0  ;;  %v3734_v52 = vperm.slane %v408_v47, 1 }
  0xf2   : > { %1553 = vmatpush.msra.mxu3 %v4778_v28  ;;  %1157 = vmatmul.f32.vlgmr.msrb.gmra.mxu1 %v4779_v17  ;;  %v3736_v57 = vperm.slane %v408_v47, 2  ;;  %v3741_v36 = vadd.f32 %v2970_v1, %v648_v10  ;;  %v4781_v44 = vunpack.c.h.bf16 %v2799_v35  ;;  %v3746_v56 = vadd.f32 %v3068_v34, %v645_v6 }
  0xf3   : > { %1127 = vmatpush.msrb.mxu0 %v4780_v59  ;;  %1186 = vmatmul.f32.vlgmr.msrb.gmra.mxu2 %v732_v24  ;;  %v646_v14 = vadd.f32 %v614_v46, %v558_v15  ;;  %v4782_v12 = vunpack.c.h.bf16 %v2896_v5  ;;  %v460_v37 = vmul.f32 %v3732_v32, %v3060_v39  ;;  %v516_v47 = vmul.f32 %v3734_v52, %v3085_v30 }
  0xf4   : > { %v736_v11 = vmax.f32 %v3741_v36, 0.0  ;;  %v474_v10 = vmul.f32 %v3671_v40, %v3351_v43  ;;  %v4783_v25 = vunpack.c.l.bf16 %v2799_v35  ;;  %v4784_v6 = vunpack.c.l.bf16 %v2760_v20 }
  0xf5   : > { %1493 = vmatpush.msra.mxu0 %v4781_v44  ;;  %1517 = vmatpush.msra.mxu1 %v4782_v12  ;;  %v729_v15 = vmax.f32 %v3713_v45, 0.0  ;;  %v3763_v28 = vadd.f32 %v3068_v34, %v649_v2  ;;  %v3766_v17 = vadd.f32 %v3441_v38, %v642_v16  ;;  %v461_v30 = vmul.f32 %v3732_v32, %v3024_v62 }
  0xf6   : > { %1534 = vmatpush.msra.mxu2 %v4784_v6  ;;  %v4785_v39 = vunpack.c.l.bf16 %v2763_v21  ;;  %v4786_v35 = vunpack.c.l.bf16 %v2896_v5  ;;  %1215 = vmatmul.f32.vlgmr.msrb.gmra.mxu3 %v736_v11  ;;  %v548_v20 = vadd.f32 %v516_v47, %v460_v37  ;;  %v604_v59 = vmul.f32 %v3736_v57, %v2888_v3 }
  0xf7   : > { %1494 = vmatpush.msra.mxu0 %v4783_v25  ;;  %v517_v16 = vmul.f32 %v3734_v52, %v3247_v53  ;;  %v530_v2 = vmul.f32 %v3673_v13, %v3087_v29  ;;  %v733_v62 = vmax.f32 %v3746_v56, 0.0  ;;  %v3784_v21 = vadd.f32 %v3441_v38, %v646_v14  ;;  %v4789_v14 = vld [vmem:[#allocation9_spill] sm:$0xff] }
  0xf8   : > { %1554 = vmatpush.msra.mxu3 %v4785_v39  ;;  %1518 = vmatpush.msra.mxu1 %v4786_v35  ;;  %v605_v5 = vmul.f32 %v3736_v57, %v3260_v7  ;;  %v523_v46 = vmul.f32 %v3495_v8, %v3552_v27  ;;  %v4787_v44 = vunpack.c.h.bf16 %v2837_v49  ;;  %v4788_v3 = vunpack.c.h.bf16 %v2766_v22 }
  0xf9   : > { %v636_v53 = vadd.f32 %v604_v59, %v548_v20  ;;  %v549_v12 = vadd.f32 %v517_v16, %v461_v30  ;;  %v562_v37 = vadd.f32 %v530_v2, %v474_v10  ;;  %v467_v47 = vmul.f32 %v3493_v9, %v3159_v61 }
  0xfa   : > { %1495 = vmatpush.msra.mxu0 %v4787_v44  ;;  %1535 = vmatpush.msra.mxu2 %v4788_v3  ;;  %v4790_v25 = vunpack.c.h.bf16 %v4789_v14  ;;  %v618_v7 = vmul.f32 %v3675_v50, %v3326_v55  ;;  %v611_v8 = vmul.f32 %v3508_v4, %v3262_v19  ;;  %v471_v6 = vmul.f32 %v3467_v41, %v3159_v61  ;;  %v2447_v3 = vld [vmem:[%s2720_s18] sm:$0x7] }
  0xfb   : > { %1160 = vmatmul.f32.gmra.mxu1 %v729_v15  ;;  %v527_v10 = vmul.f32 %v3469_v31, %v3552_v27  ;;  %1189 = vmatmul.f32.gmra.mxu2 %v733_v62  ;;  %v3811_v9 = vadd.f32 %v2970_v1, %v636_v53  ;;  %v637_v30 = vadd.f32 %v605_v5, %v549_v12  ;;  %v4791_v31 = vunpack.c.l.bf16 %v2837_v49 }
  0xfc   : > { %1555 = vmatpush.msra.mxu3 %v4790_v25  ;;  %v555_v39 = vadd.f32 %v523_v46, %v467_v47  ;;  %v615_v35 = vmul.f32 %v3491_v48, %v3262_v19  ;;  %v650_v20 = vadd.f32 %v618_v7, %v562_v37  ;;  %v462_v4 = vmul.f32 %v3732_v32, %v3351_v43  ;;  %v4792_v48 = vld [vmem:[#allocation21_spill] sm:$0xff] }
  0xfd   : > { %v559_v59 = vadd.f32 %v527_v10, %v471_v6  ;;  %v518_v41 = vmul.f32 %v3734_v52, %v3087_v29  ;;  %1496 = vmatpush.msra.mxu0 %v4791_v31  ;;  %v724_v1 = vmax.f32 %v3811_v9, 0.0  ;;  %v737_v16 = vmax.f32 %v3763_v28, 0.0  ;;  %v4795_v29 = vld [vmem:[#allocation15_spill] sm:$0xff]  ;;  %v2449_v10 = vld [vmem:[%s2720_s18 + $0x8] sm:$0x7] }
  0xfe   : > { %v475_v2 = vmul.f32 %v3671_v40, %v3159_v61  ;;  %v4793_v5 = vunpack.c.h.bf16 %v4792_v48  ;;  %v4794_v46 = vunpack.c.l.bf16 %v2766_v22  ;;  %v531_v43 = vmul.f32 %v3673_v13, %v3552_v27 }
  0xff   : > { %v4796_v44 = vunpack.c.h.bf16 %v4795_v29  ;;  %1128 = vmatmul.f32.vlgmr.msrb.gmra.mxu0 %v724_v1  ;;  %1218 = vmatmul.f32.gmra.mxu3 %v737_v16  ;;  %v730_v49 = vmax.f32 %v3766_v17, 0.0  ;;  %v3839_v40 = vadd.f32 %v3068_v34, %v637_v30  ;;  %v643_v22 = vadd.f32 %v611_v8, %v555_v39  ;;  %v2448_v34 = vld [vmem:[%s2720_s18 + $0x4] sm:$0x7]  ;;  %v2450_v39 = vld [vmem:[%s2720_s18 + $0xc] sm:$0x7] }
 0x100   : > { %1519 = vmatpush.msra.mxu1 %v4793_v5  ;;  %1536 = vmatpush.msra.mxu2 %v4794_v46  ;;  %v1228_v13 = vrot.slane %v2447_v3, 1  ;;  %v734_v53 = vmax.f32 %v3784_v21, 0.0  ;;  %v3844_v12 = vadd.f32 %v3441_v38, %v650_v20  ;;  %v647_v37 = vadd.f32 %v615_v35, %v559_v59  ;;  %v4800_v35 = vld [vmem:[#allocation10_spill] sm:$0xff]  ;;  %v2451_v5 = vld [vmem:[%s2720_s18 + $0x10] sm:$0x7] }
 0x101   : > { %1497 = vmatpush.msra.mxu0 %v4796_v44  ;;  %v550_v47 = vadd.f32 %v518_v41, %v462_v4  ;;  %v4797_v25 = vunpack.c.l.bf16 %v4795_v29  ;;  %v4798_v7 = vunpack.c.l.bf16 %v4789_v14  ;;  %v563_v6 = vadd.f32 %v531_v43, %v475_v2  ;;  %v4802_v4 = vld [vmem:[#allocation18_spill] sm:$0xff]  ;;  %v2452_v43 = vld [vmem:[%s2720_s18 + $0x14] sm:$0x7]  ;;  %v4804_v44 = vld [vmem:[#allocation11_spill] sm:$0xff] }
 0x102   : > { %2345 = vpush %v1228_v13  ;;  %v1229_v8 = vrot.slane %v2448_v34, 1  ;;  %v1230_v30 = vrot.slane %v2449_v10, 1  ;;  %v1231_v31 = vrot.slane %v2450_v39, 1  ;;  %v4799_v20 = vunpack.c.l.bf16 %v4792_v48 }
 0x103   : > { %1498 = vmatpush.msra.mxu0 %v4797_v25  ;;  %1556 = vmatpush.msra.mxu3 %v4798_v7  ;;  %v4801_v59 = vunpack.c.h.bf16 %v4800_v35  ;;  %v606_v14 = vmul.f32 %v3736_v57, %v3326_v55  ;;  %v4803_v41 = vunpack.c.h.bf16 %v4802_v4  ;;  %v3866_v2 = vadd.f32 %v3355_v0, %v643_v22 }
 0x104   : > { %1520 = vmatpush.msra.mxu1 %v4799_v20  ;;  %1192 = vmatmul.f32.gmra.mxu2 %v734_v53  ;;  %v619_v48 = vmul.f32 %v3675_v50, %v3262_v19  ;;  %2347 = vpush %v1229_v8  ;;  %v1232_v46 = vrot.slane %v2451_v5, 1  ;;  %v1233_v29 = vrot.slane %v2452_v43, 1  ;;  %v4805_v3 = vunpack.c.h.bf16 %v4804_v44  ;;  %v4807_v50 = vld [vmem:[#allocation25_spill] sm:$0xff] }
 0x105   : > { %1537 = vmatpush.msra.mxu2 %v4801_v59  ;;  %1163 = vmatmul.f32.gmra.mxu1 %v730_v49  ;;  %v725_v55 = vmax.f32 %v3839_v40, 0.0  ;;  %v4661_v13 = vmax.f32 %v3844_v12, 0.0  ;;  %v3877_v25 = vadd.f32 %v3355_v0, %v647_v37  ;;  %v638_v22 = vadd.f32 %v606_v14, %v550_v47  ;;  %2349 = vpush %v1230_v30  ;;  %v4811_v47 = vld [vmem:[#allocation22_spill] sm:$0xff] }
 0x106   : > { %1499 = vmatpush.msra.mxu0 %v4803_v41  ;;  %1557 = vmatpush.msra.mxu3 %v4805_v3  ;;  %v4806_v7 = vunpack.c.l.bf16 %v4802_v4  ;;  %v4808_v34 = vunpack.c.h.bf16 %v4807_v50  ;;  %v651_v8 = vadd.f32 %v619_v48, %v563_v6  ;;  %2351 = vpush %v1231_v31  ;;  %v463_v10 = vmul.f32 %v3732_v32, %v3159_v61  ;;  %v4815_v32 = vld [vmem:[#allocation12_spill] sm:$0xff]  ;;  %v4817_v4 = vld [vmem:[#allocation13_spill] sm:$0xff] }
 0x107   : > { %v519_v39 = vmul.f32 %v3734_v52, %v3552_v27  ;;  %v4809_v20 = vunpack.c.l.bf16 %v4800_v35  ;;  %v4810_v37 = vunpack.c.l.bf16 %v4804_v44  ;;  %2353 = vpush %v1232_v46  ;;  %v4812_v30 = vunpack.c.h.bf16 %v4811_v47  ;;  %1131 = vmatmul.f32.gmra.mxu0 %v725_v55  ;;  %1221 = vmatmul.f32.gmra.mxu3 %v4661_v13  ;;  %v4819_v48 = vld [vmem:[#allocation28_spill] sm:$0xff]  ;;  %v4821_v46 = vld [vmem:[#allocation26_spill] sm:$0xff] }
 0x108   : > { %1500 = vmatpush.msra.mxu0 %v4806_v7  ;;  %1521 = vmatpush.msra.mxu1 %v4808_v34  ;;  %v4813_v59 = vunpack.c.l.bf16 %v4807_v50  ;;  %2355 = vpush %v1233_v29  ;;  %v731_v61 = vmax.f32 %v3866_v2, 0.0  ;;  %v4814_v27 = vunpack.c.l.bf16 %v4811_v47  ;;  %v4816_v52 = vunpack.c.h.bf16 %v4815_v32 }
 0x109   : > { %1538 = vmatpush.msra.mxu2 %v4809_v20  ;;  %1558 = vmatpush.msra.mxu3 %v4810_v37  ;;  %v4659_v6 = vmax.f32 %v3877_v25, 0.0  ;;  %v3906_v31 = vadd.f32 %v3441_v38, %v638_v22  ;;  %v3909_v35 = vadd.f32 %v3355_v0, %v651_v8  ;;  %v551_v14 = vadd.f32 %v519_v39, %v463_v10  ;;  %v4827_v8 = vld [vmem:[#allocation16_spill] sm:$0xff]  ;;  %v4831_v39 = vld [vmem:[#allocation29_spill] sm:$0xff]  ;;  %v4833_v37 = vld [vmem:[#allocation30_spill] sm:$0xff] }
 0x10a   : > { %1501 = vmatpush.msra.mxu0 %v4812_v30  ;;  %1522 = vmatpush.msra.mxu1 %v4813_v59  ;;  %v4818_v41 = vunpack.c.h.bf16 %v4817_v4  ;;  %v4820_v5 = vunpack.c.h.bf16 %v4819_v48  ;;  %v4822_v43 = vunpack.c.h.bf16 %v4821_v46  ;;  %v607_v38 = vmul.f32 %v3736_v57, %v3262_v19  ;;  %v4829_v19 = vld [vmem:[#allocation14_spill] sm:$0xff] }
 0x10b   : > { %1539 = vmatpush.msra.mxu2 %v4816_v52  ;;  %v4823_v29 = vunpack.c.l.bf16 %v4817_v4  ;;  %v4824_v44 = vunpack.c.l.bf16 %v4815_v32  ;;  %v4825_v3 = vunpack.c.l.bf16 %v4821_v46  ;;  %v4660_v22 = vmax.f32 %v3906_v31, 0.0 }
 0x10c   : > { %1502 = vmatpush.msra.mxu0 %v4814_v27  ;;  %1559 = vmatpush.msra.mxu3 %v4818_v41  ;;  %v4658_v7 = vmax.f32 %v3909_v35, 0.0  ;;  %v639_v50 = vadd.f32 %v607_v38, %v551_v14  ;;  %v4826_v34 = vunpack.c.l.bf16 %v4819_v48  ;;  %v4828_v10 = vunpack.c.h.bf16 %v4827_v8  ;;  %v4839_v14 = vld [vmem:[#allocation17_spill] sm:$0xff]  ;;  %v4841_v41 = vld [vmem:[#allocation19_spill] sm:$0xff] }
 0x10d   : > { %1523 = vmatpush.msra.mxu1 %v4820_v5  ;;  %1195 = vmatmul.f32.gmra.mxu2 %v4659_v6  ;;  %v4830_v57 = vunpack.c.h.bf16 %v4829_v19  ;;  %v4832_v20 = vunpack.c.h.bf16 %v4831_v39  ;;  %v4834_v47 = vunpack.c.h.bf16 %v4833_v37  ;;  %v4835_v30 = vunpack.c.l.bf16 %v4829_v19  ;;  %v4843_v5 = vld [vmem:[#allocation31_spill] sm:$0xff] }
 0x10e   : > { %1166 = vmatmul.f32.gmra.mxu1 %v731_v61  ;;  %1503 = vmatpush.msra.mxu0 %v4822_v43  ;;  %v3948_v59 = vadd.f32 %v3355_v0, %v639_v50  ;;  %v4836_v27 = vunpack.c.l.bf16 %v4827_v8  ;;  %v4837_v32 = vunpack.c.l.bf16 %v4831_v39  ;;  %v4838_v52 = vunpack.c.l.bf16 %v4833_v37  ;;  %v4845_v0 = vld [vmem:[#allocation32_spill] sm:$0xff]  ;;  %v4856_v39 = vld [vmem:[#allocation33_spill] sm:$0xff] }
 0x10f   : > { %1560 = vmatpush.msra.mxu3 %v4823_v29  ;;  %1540 = vmatpush.msra.mxu2 %v4824_v44  ;;  %v4840_v4 = vunpack.c.h.bf16 %v4839_v14  ;;  %v4842_v48 = vunpack.c.h.bf16 %v4841_v41  ;;  %v4844_v46 = vunpack.c.h.bf16 %v4843_v5  ;;  %v4846_v43 = vunpack.c.h.bf16 %v4845_v0 }
 0x110   : > { %1504 = vmatpush.msra.mxu0 %v4825_v3  ;;  %1524 = vmatpush.msra.mxu1 %v4826_v34  ;;  %v4847_v38 = vunpack.c.l.bf16 %v4839_v14  ;;  %v4657_v29 = vmax.f32 %v3948_v59, 0.0  ;;  %v4848_v44 = vunpack.c.l.bf16 %v4841_v41  ;;  %v4849_v3 = vunpack.c.l.bf16 %v4843_v5  ;;  %v4851_v34 = vld [vmem:[#allocation20_spill] sm:$0xff]  ;;  %v4864_v14 = vld [vmem:[#allocation27_spill] sm:$0xff] }
 0x111   : > { %1561 = vmatpush.msra.mxu3 %v4828_v10  ;;  %1541 = vmatpush.msra.mxu2 %v4830_v57  ;;  %v4850_v50 = vunpack.c.l.bf16 %v4845_v0  ;;  %v4852_v8 = vunpack.c.h.bf16 %v4851_v34  ;;  %v4853_v10 = vld [vmem:[#allocation23_spill] sm:$0xff]  ;;  %v4855_v57 = vunpack.c.l.bf16 %v4851_v34  ;;  %v4870_v0 = vunpack.c.l.bf16 %v4864_v14 }
 0x112   : > { %1505 = vmatpush.msra.mxu0 %v4832_v20  ;;  %1224 = vmatmul.f32.gmra.mxu3 %v4658_v7  ;;  %v4854_v19 = vunpack.c.h.bf16 %v4853_v10  ;;  %v4857_v20 = vunpack.c.h.bf16 %v4856_v39  ;;  %v4858_v37 = vunpack.c.l.bf16 %v4853_v10  ;;  %v4868_v5 = vld [vmem:[#allocation35_spill] sm:$0xff]  ;;  %v4133_v7 = vpop.permute.xlu0 %1362 }
 0x113   : > { %1134 = vmatmul.f32.gmra.mxu0 %v4660_v22  ;;  %1525 = vmatpush.msra.mxu1 %v4834_v47  ;;  %v4859_v47 = vld [vmem:[#allocation43_spill] sm:$0xff]  ;;  %v4147_v22 = vpop.permute.xlu2 %1372 }
 0x114   : > { %1542 = vmatpush.msra.mxu2 %v4835_v30  ;;  %1562 = vmatpush.msra.mxu3 %v4836_v27  ;;  %v4860_v30 = vunpack.c.h.bf16 %v4859_v47  ;;  %v4861_v27 = vld [vmem:[#allocation24_spill] sm:$0xff]  ;;  %v4866_v41 = vunpack.c.l.bf16 %v4859_v47  ;;  %v4878_v10 = vld [vmem:[#allocation39_spill] sm:$0xff] }
 0x115   : > { %1506 = vmatpush.msra.mxu0 %v4837_v32  ;;  %1526 = vmatpush.msra.mxu1 %v4838_v52  ;;  %v4862_v32 = vunpack.c.h.bf16 %v4861_v27  ;;  %v4863_v52 = vunpack.c.l.bf16 %v4856_v39  ;;  %v4881_v39 = vld [vmem:[#allocation36_spill] sm:$0xff]  ;;  %v4884_v47 = vunpack.c.l.bf16 %v4878_v10 }
 0x116   : > { %1543 = vmatpush.msra.mxu2 %v4840_v4  ;;  %1563 = vmatpush.msra.mxu3 %v4842_v48  ;;  %v4865_v4 = vunpack.c.h.bf16 %v4864_v14  ;;  %v4867_v48 = vunpack.c.l.bf16 %v4861_v27 }
 0x117   : > { %1507 = vmatpush.msra.mxu0 %v4844_v46  ;;  %1527 = vmatpush.msra.mxu1 %v4846_v43  ;;  %v4869_v46 = vunpack.c.h.bf16 %v4868_v5  ;;  %v4871_v43 = vld [vmem:[#allocation34_spill] sm:$0xff] }
 0x118   : > { %1544 = vmatpush.msra.mxu2 %v4847_v38  ;;  %1564 = vmatpush.msra.mxu3 %v4848_v44  ;;  %v4872_v38 = vunpack.c.h.bf16 %v4871_v43  ;;  %v4873_v44 = vunpack.c.l.bf16 %v4868_v5  ;;  %v4876_v34 = vunpack.c.l.bf16 %v4871_v43  ;;  %v4897_v43 = vld [vmem:[#allocation46_spill] sm:$0xff] }
 0x119   : > { %1508 = vmatpush.msra.mxu0 %v4849_v3  ;;  %1528 = vmatpush.msra.mxu1 %v4850_v50  ;;  %v4874_v3 = vld [vmem:[#allocation37_spill] sm:$0xff] }
 0x11a   : > { %1545 = vmatpush.msra.mxu2 %v4852_v8  ;;  %1565 = vmatpush.msra.mxu3 %v4854_v19  ;;  %v4875_v50 = vunpack.c.h.bf16 %v4874_v3  ;;  %v4877_v8 = vunpack.c.h.bf16 %v3296_v23  ;;  %v4879_v19 = vunpack.c.h.bf16 %v4878_v10  ;;  %v4902_v10 = vld [vmem:[#allocation49_spill] sm:$0xff] }
 0x11b   : > { %1137 = vmatmul.f32.gmra.mxu0 %v4657_v29  ;;  %1593 = vmatpush.msrb.mxu1 %v4857_v20  ;;  %v4882_v20 = vunpack.c.h.bf16 %v4881_v39 }
 0x11c   : > { %1546 = vmatpush.msra.mxu2 %v4855_v57  ;;  %1566 = vmatpush.msra.mxu3 %v4858_v37  ;;  %v4880_v57 = vunpack.c.l.bf16 %v4874_v3  ;;  %v4883_v37 = vunpack.c.l.bf16 %v3296_v23  ;;  %v4893_v23 = vld [vmem:[#allocation40_spill] sm:$0xff] }
 0x11d   : > { %1573 = vmatpush.msrb.mxu0 %v4860_v30  ;;  %1594 = vmatpush.msrb.mxu1 %v4863_v52  ;;  %v4885_v30 = vld [vmem:[#allocation41_spill] sm:$0xff]  ;;  %v4888_v52 = vld [vmem:[#allocation56_spill] sm:$0xff]  ;;  %v4894_v5 = vunpack.c.h.bf16 %v4893_v23 }
 0x11e   : > { %1547 = vmatpush.msra.mxu2 %v4862_v32  ;;  %1567 = vmatpush.msra.mxu3 %v4865_v4  ;;  %v4886_v27 = vunpack.c.h.bf16 %v4885_v30  ;;  %v4887_v32 = vunpack.c.l.bf16 %v4881_v39  ;;  %v4889_v14 = vunpack.c.h.bf16 %v4888_v52  ;;  %v4890_v4 = vld [vmem:[#allocation44_spill] sm:$0xff]  ;;  %v4905_v39 = vld [vmem:[#allocation45_spill] sm:$0xff] }
 0x11f   : > { %1574 = vmatpush.msrb.mxu0 %v4866_v41  ;;  %1595 = vmatpush.msrb.mxu1 %v4869_v46  ;;  %v4891_v41 = vunpack.c.h.bf16 %v4890_v4  ;;  %v4895_v46 = vunpack.c.l.bf16 %v4888_v52  ;;  %v4900_v3 = vld [vmem:[#allocation60_spill] sm:$0xff]  ;;  %v4912_v52 = vunpack.c.h.bf16 %v3503_v63 }
 0x120   : > { %1548 = vmatpush.msra.mxu2 %v4867_v48  ;;  %1568 = vmatpush.msra.mxu3 %v4870_v0  ;;  %v4892_v48 = vunpack.c.l.bf16 %v4885_v30  ;;  %v4896_v0 = vunpack.c.l.bf16 %v4890_v4  ;;  %v4909_v30 = vld [vmem:[#allocation51_spill] sm:$0xff] }
 0x121   : > { %1596 = vmatpush.msrb.mxu1 %v4873_v44  ;;  %1575 = vmatpush.msrb.mxu0 %v4877_v8  ;;  %v4899_v44 = vunpack.c.l.bf16 %v4893_v23 }
 0x122   : > { %1613 = vmatpush.msrb.mxu2 %v4872_v38  ;;  %1633 = vmatpush.msrb.mxu3 %v4875_v50  ;;  %v4898_v38 = vunpack.c.h.bf16 %v4897_v43  ;;  %v4901_v50 = vunpack.c.h.bf16 %v4900_v3 }
 0x123   : > { %1597 = vmatpush.msrb.mxu1 %v4879_v19  ;;  %1576 = vmatpush.msrb.mxu0 %v4883_v37  ;;  %v4903_v19 = vunpack.c.h.bf16 %v4902_v10  ;;  %v4907_v37 = vunpack.c.l.bf16 %v4900_v3 }
 0x124   : > { %1614 = vmatpush.msrb.mxu2 %v4876_v34  ;;  %1634 = vmatpush.msrb.mxu3 %v4880_v57  ;;  %v2453_v34 = vld [vmem:[%s2720_s18 + $0x18] sm:$0x7]  ;;  %v4904_v57 = vunpack.c.l.bf16 %v4897_v43 }
 0x125   : > { %1598 = vmatpush.msrb.mxu1 %v4884_v47  ;;  %1577 = vmatpush.msrb.mxu0 %v4889_v14  ;;  %v1234_v8 = vrot.slane %v2453_v34, 1  ;;  %v4908_v47 = vunpack.c.l.bf16 %v4902_v10  ;;  %v4913_v14 = vld [vmem:[#allocation57_spill] sm:$0xff]  ;;  %v4927_v10 = vld [vmem:[#allocation58_spill] sm:$0xff] }
 0x126   : > { %1615 = vmatpush.msrb.mxu2 %v4882_v20  ;;  %1635 = vmatpush.msrb.mxu3 %v4886_v27  ;;  %v4906_v20 = vunpack.c.h.bf16 %v4905_v39  ;;  %v4910_v27 = vunpack.c.h.bf16 %v4909_v30  ;;  %v4914_v4 = vunpack.c.h.bf16 %v4913_v14  ;;  %v4924_v34 = vld [vmem:[#allocation65_spill] sm:$0xff] }
 0x127   : > { %1599 = vmatpush.msrb.mxu1 %v4891_v41  ;;  %1578 = vmatpush.msrb.mxu0 %v4895_v46  ;;  %2357 = vpush %v1234_v8  ;;  %v4915_v41 = vunpack.c.l.bf16 %v4909_v30  ;;  %v4919_v46 = vunpack.c.l.bf16 %v4913_v14  ;;  %v4925_v8 = vunpack.c.h.bf16 %v4924_v34  ;;  %v4934_v30 = vunpack.c.h.bf16 %v3606_v18 }
 0x128   : > { %1616 = vmatpush.msrb.mxu2 %v4887_v32  ;;  %1636 = vmatpush.msrb.mxu3 %v4892_v48  ;;  %v4911_v32 = vunpack.c.l.bf16 %v4905_v39  ;;  %v4916_v48 = vld [vmem:[#allocation50_spill] sm:$0xff]  ;;  %v4930_v39 = vunpack.c.l.bf16 %v4924_v34  ;;  %v4939_v14 = vunpack.c.l.bf16 %v3606_v18  ;;  %v4946_v18 = vunpack.c.l.bf16 %v3658_v42 }
 0x129   : > { %1600 = vmatpush.msrb.mxu1 %v4896_v0  ;;  %1579 = vmatpush.msrb.mxu0 %v4901_v50  ;;  %v4917_v23 = vunpack.c.h.bf16 %v4916_v48  ;;  %v4920_v0 = vld [vmem:[#allocation59_spill] sm:$0xff]  ;;  %v4922_v3 = vunpack.c.l.bf16 %v4916_v48  ;;  %v4923_v50 = vunpack.c.h.bf16 %v3576_v33 }
 0x12a   : > { %1617 = vmatpush.msrb.mxu2 %v4894_v5  ;;  %1637 = vmatpush.msrb.mxu3 %v4898_v38  ;;  %v4918_v5 = vunpack.c.l.bf16 %v3503_v63  ;;  %v4921_v43 = vunpack.c.h.bf16 %v4920_v0  ;;  %v2454_v38 = vld [vmem:[%s2720_s18 + $0x1c] sm:$0x7]  ;;  %v4926_v63 = vunpack.c.l.bf16 %v4920_v0 }
 0x12b   : > { %1601 = vmatpush.msrb.mxu1 %v4903_v19  ;;  %1580 = vmatpush.msrb.mxu0 %v4907_v37  ;;  %v4928_v19 = vunpack.c.h.bf16 %v4927_v10 }
 0x12c   : > { %1618 = vmatpush.msrb.mxu2 %v4899_v44  ;;  %1638 = vmatpush.msrb.mxu3 %v4904_v57  ;;  %v1235_v44 = vrot.slane %v2454_v38, 1  ;;  %v4929_v57 = vunpack.c.l.bf16 %v3576_v33  ;;  %v4937_v33 = vld [vmem:[#allocation66_spill] sm:$0xff] }
 0x12d   : > { %1602 = vmatpush.msrb.mxu1 %v4908_v47  ;;  %1581 = vmatpush.msrb.mxu0 %v4912_v52  ;;  %v4933_v47 = vunpack.c.l.bf16 %v4927_v10  ;;  %v4938_v52 = vunpack.c.h.bf16 %v4937_v33  ;;  %v4942_v48 = vunpack.c.l.bf16 %v4937_v33 }
 0x12e   : > { %1619 = vmatpush.msrb.mxu2 %v4906_v20  ;;  %1639 = vmatpush.msrb.mxu3 %v4910_v27  ;;  %2359 = vpush %v1235_v44  ;;  %v4931_v20 = vld [vmem:[#allocation67_spill] sm:$0xff]  ;;  %v4935_v27 = vunpack.c.h.bf16 %v3506_v60 }
 0x12f   : > { %1603 = vmatpush.msrb.mxu1 %v4914_v4  ;;  %1582 = vmatpush.msrb.mxu0 %v4918_v5  ;;  %v4932_v37 = vunpack.c.h.bf16 %v4931_v20  ;;  %v4940_v4 = vunpack.c.l.bf16 %v3506_v60  ;;  %v4944_v5 = vunpack.c.l.bf16 %v3517_v58  ;;  %v4947_v60 = vld [vmem:[#allocation68_spill] sm:$0xff] }
 0x130   : > { %1620 = vmatpush.msrb.mxu2 %v4911_v32  ;;  %1640 = vmatpush.msrb.mxu3 %v4915_v41  ;;  %v4936_v32 = vunpack.c.l.bf16 %v4931_v20  ;;  %v4941_v41 = vunpack.c.h.bf16 %v3517_v58  ;;  %v4948_v0 = vunpack.c.h.bf16 %v4947_v60  ;;  %v4950_v38 = vunpack.c.l.bf16 %v4947_v60  ;;  %v4957_v60 = vld [vmem:[#allocation48_spill] sm:$0xff] }
 0x131   : > { %1604 = vmatpush.msrb.mxu1 %v4919_v46  ;;  %1583 = vmatpush.msrb.mxu0 %v4923_v50  ;;  %v4945_v46 = vunpack.c.h.bf16 %v3514_v51 }
 0x132   : > { %1621 = vmatpush.msrb.mxu2 %v4917_v23  ;;  %1641 = vmatpush.msrb.mxu3 %v4921_v43  ;;  %v4943_v23 = vunpack.c.h.bf16 %v3658_v42  ;;  %v4949_v43 = vunpack.c.l.bf16 %v3514_v51 }
 0x133   : > { %1605 = vmatpush.msrb.mxu1 %v4925_v8  ;;  %1584 = vmatpush.msrb.mxu0 %v4929_v57  ;;  %s2346_s17 = spop %2345 }
 0x134   : > { %1622 = vmatpush.msrb.mxu2 %v4922_v3  ;;  %1642 = vmatpush.msrb.mxu3 %v4926_v63  ;;  %v1237_v63 = vstv %s2346_s17  ;;  %s1906_s17 = sshll.u32 %s4327_s20, 4  ;;  %s1907_s17 = int_to_ptr.vmem [resolvable:$true] %s1906_s17 }
 0x135   : > { %1606 = vmatpush.msrb.mxu1 %v4930_v39  ;;  %1585 = vmatpush.msrb.mxu0 %v4934_v30  ;;  %s2348_s24 = spop %2347 }
 0x136   : > { %1623 = vmatpush.msrb.mxu2 %v4928_v19  ;;  %1643 = vmatpush.msrb.mxu3 %v4932_v37  ;;  %v1240_v42 = vstv %s2348_s24  ;;  %s2350_s25 = spop %2349  ;;  %s1895_s24 = scalar_lea.sflag [#allocation5], %s2697_s23 }
 0x137   : > { %1607 = vmatpush.msrb.mxu1 %v4935_v27  ;;  %1586 = vmatpush.msrb.mxu0 %v4939_v14  ;;  %s2352_s18 = spop %2351 }
 0x138   : > { %1624 = vmatpush.msrb.mxu2 %v4933_v47  ;;  %1644 = vmatpush.msrb.mxu3 %v4936_v32  ;;  %v1243_v32 = vstv %s2350_s25  ;;  %v1246_v33 = vstv %s2352_s18  ;;  %s4177_s30 = spop %2353 }
 0x139   : > { %1608 = vmatpush.msrb.mxu1 %v4940_v4  ;;  %1587 = vmatpush.msrb.mxu0 %v4943_v23  ;;  %s2356_s13 = spop %2355 }
 0x13a   : > { %1625 = vmatpush.msrb.mxu2 %v4938_v52  ;;  %1645 = vmatpush.msrb.mxu3 %v4941_v41  ;;  %v1071_v58 = vpop.f32.mrf.mxu2  ;;  %v4951_v52 = vld [vmem:[#allocation54_spill] sm:$0xff]  ;;  %v4953_v41 = vld [vmem:[#allocation55_spill] sm:$0xff] }
 0x13b   : > { %1588 = vmatpush.msrb.mxu0 %v4946_v18  ;;  %v4952_v14 = vmax.f32 %v4951_v52, 0.0 }
 0x13c   : > { %1626 = vmatpush.msrb.mxu2 %v4942_v48  ;;  %1646 = vmatpush.msrb.mxu3 %v4944_v5  ;;  %v4954_v48 = vmax.f32 %v4953_v41, 0.0  ;;  %v4955_v5 = vld [vmem:[#allocation47_spill] sm:$0xff] }
 0x13e   : > { %1627 = vmatpush.msrb.mxu2 %v4945_v46  ;;  %1647 = vmatpush.msrb.mxu3 %v4948_v0  ;;  %v4956_v46 = vmax.f32 %v4955_v5, 0.0  ;;  %v4958_v0 = vmax.f32 %v4957_v60, 0.0  ;;  %v4135_v60 = vpop.permute.xlu1 %1367 }
 0x140   : > { %1628 = vmatpush.msrb.mxu2 %v4949_v43  ;;  %1648 = vmatpush.msrb.mxu3 %v4950_v38  ;;  %v4959_v38 = vld [vmem:[#allocation61_spill] sm:$0xff] }
 0x142   : > { %v1100_v34 = vpop.f32.mrf.mxu3 }
 0x143   : > { %v1272_v52 = vmul.f32 %v1246_v33, %v1100_v34 }
 0x144   : > { %v1042_v44 = vpop.f32.mrf.mxu1 }
 0x145   : > { %v1013_v3 = vpop.f32.mrf.mxu0  ;;  %v1264_v47 = vmul.f32 %v1240_v42, %v1042_v44  ;;  %v4961_v44 = vld [vmem:[#allocation62_spill] sm:$0xff] }
 0x146   : > { %v1260_v37 = vmul.f32 %v1237_v63, %v1013_v3 }
 0x147   : > { %v1296_v43 = vadd.f32 %v1264_v47, %v4958_v0 }
 0x148   : > { %v1292_v18 = vadd.f32 %v1260_v37, %v4956_v46 }
 0x149   : > { %v1328_v5 = vmax.f32 %v1296_v43, 0.0 }
 0x14a   : > { %v1324_v37 = vmax.f32 %v1292_v18, 0.0 }
 0x14d   : > { %v1045_v50 = vpop.f32.mrf.mxu1  ;;  %v1016_v8 = vpop.f32.mrf.mxu0 }
 0x14e   : > { %v1261_v51 = vmul.f32 %v1237_v63, %v1016_v8  ;;  %v1265_v20 = vmul.f32 %v1240_v42, %v1045_v50  ;;  %v4960_v50 = vmax.f32 %v4959_v38, 0.0  ;;  %v4962_v8 = vmax.f32 %v4961_v44, 0.0  ;;  %v4963_v38 = vld [vmem:[#allocation38_spill] sm:$0xff] }
 0x14f   : > { %v1074_v10 = vpop.f32.mrf.mxu2  ;;  %v1103_v19 = vpop.f32.mrf.mxu3  ;;  %v4965_v44 = vld [vmem:[#allocation42_spill] sm:$0xff] }
 0x150   : > { %v1293_v4 = vadd.f32 %v1261_v51, %v4952_v14  ;;  %v1297_v23 = vadd.f32 %v1265_v20, %v4954_v48  ;;  %v1268_v51 = vmul.f32 %v1243_v32, %v1071_v58  ;;  %v1269_v14 = vmul.f32 %v1243_v32, %v1074_v10  ;;  %v4967_v58 = vld [vmem:[#allocation52_spill] sm:$0xff] }
 0x151   : > { %v1273_v20 = vmul.f32 %v1246_v33, %v1103_v19  ;;  %v4968_v34 = vmax.f32 %v4967_v58, 0.0  ;;  %v4969_v19 = vld [vmem:[#allocation53_spill] sm:$0xff] }
 0x152   : > { %v1325_v41 = vmax.f32 %v1293_v4, 0.0  ;;  %v1329_v48 = vmax.f32 %v1297_v23, 0.0  ;;  %v4970_v4 = vmax.f32 %v4969_v19, 0.0 }
 0x153   : > { %v1301_v10 = vadd.f32 %v1269_v14, %v4968_v34  ;;  %v4975_v34 = vld [vmem:[#allocation69_spill] sm:$0xff] }
 0x154   : > { %v1305_v23 = vadd.f32 %v1273_v20, %v4970_v4 }
 0x156   : > { %v1048_v39 = vpop.f32.mrf.mxu1 }
 0x157   : > { %v1019_v57 = vpop.f32.mrf.mxu0  ;;  %v1266_v27 = vmul.f32 %v1240_v42, %v1048_v39 }
 0x158   : > { %v1262_v30 = vmul.f32 %v1237_v63, %v1019_v57  ;;  %s2358_s0 = spop %2357 }
 0x159   : > { %v1298_v57 = vadd.f32 %v1266_v27, %v4962_v8  ;;  %v4964_v27 = vmax.f32 %v4963_v38, 0.0  ;;  %v4966_v8 = vmax.f32 %v4965_v44, 0.0  ;;  %v4971_v38 = vld [vmem:[#allocation63_spill] sm:$0xff]  ;;  %v4973_v44 = vld [vmem:[#allocation64_spill] sm:$0xff] }
 0x15a   : > { %v1294_v3 = vadd.f32 %v1262_v30, %v4960_v50 }
 0x15b   : > { %v1330_v0 = vmax.f32 %v1298_v57, 0.0  ;;  %v1300_v50 = vadd.f32 %v1268_v51, %v4964_v27  ;;  %v1304_v6 = vadd.f32 %v1272_v52, %v4966_v8  ;;  %v1380_v51 = vmul.f32 %v4133_v7, %v1324_v37 }
 0x15c   : > { %v1326_v30 = vmax.f32 %v1294_v3, 0.0  ;;  %v1384_v52 = vmul.f32 %v4133_v7, %v1328_v5  ;;  %v4972_v27 = vmax.f32 %v4971_v38, 0.0  ;;  %v4974_v8 = vmax.f32 %v4973_v44, 0.0  ;;  %v4161_v44 = vpop.permute.xlu0 %1377 }
 0x15d   : > { %v1077_v39 = vpop.f32.mrf.mxu2  ;;  %v1336_v37 = vmax.f32 %v1304_v6, 0.0  ;;  %v1337_v5 = vmax.f32 %v1305_v23, 0.0 }
 0x15e   : > { %v1106_v29 = vpop.f32.mrf.mxu3  ;;  %v1270_v46 = vmul.f32 %v1243_v32, %v1077_v39  ;;  %v1385_v39 = vmul.f32 %v4135_v60, %v1329_v48  ;;  %v1382_v58 = vmul.f32 %v4147_v22, %v1326_v30  ;;  %v4976_v48 = vmax.f32 %v4975_v34, 0.0 }
 0x15f   : > { %v1274_v47 = vmul.f32 %v1246_v33, %v1106_v29  ;;  %v1381_v29 = vmul.f32 %v4135_v60, %v1325_v41  ;;  %v1386_v41 = vmul.f32 %v4147_v22, %v1330_v0  ;;  %s2360_s12 = spop %2359 }
 0x160   : > { %v1302_v14 = vadd.f32 %v1270_v46, %v4972_v27  ;;  %v1421_v38 = vadd.f32 %v1385_v39, %v1384_v52 }
 0x161   : > { %v1306_v20 = vadd.f32 %v1274_v47, %v4974_v8  ;;  %v1412_v13 = vadd.f32 %v1381_v29, %v1380_v51  ;;  %v1392_v51 = vmul.f32 %v4133_v7, %v1336_v37 }
 0x162   : > { %v1334_v47 = vmax.f32 %v1302_v14, 0.0  ;;  %v1422_v0 = vadd.f32 %v1421_v38, %v1386_v41 }
 0x163   : > { %v1338_v30 = vmax.f32 %v1306_v20, 0.0  ;;  %v1413_v8 = vadd.f32 %v1412_v13, %v1382_v58  ;;  %v4979_v58 = vld [vmem:[#allocation71_spill] sm:$0xff] }
 0x164   : > { %v1390_v14 = vmul.f32 %v4147_v22, %v1334_v47  ;;  %v4980_v41 = vmax.f32 %v4979_v58, 0.0 }
 0x165   : > { %v1394_v20 = vmul.f32 %v4147_v22, %v1338_v30 }
 0x166   : > { %v1022_v18 = vpop.f32.mrf.mxu0  ;;  %v1051_v43 = vpop.f32.mrf.mxu1 }
 0x167   : > { %v1263_v3 = vmul.f32 %v1237_v63, %v1022_v18  ;;  %v1267_v57 = vmul.f32 %v1240_v42, %v1051_v43  ;;  %v4977_v42 = vld [vmem:[#allocation70_spill] sm:$0xff]  ;;  %v1332_v18 = vmax.f32 %v1300_v50, 0.0  ;;  %v1333_v43 = vmax.f32 %v1301_v10, 0.0 }
 0x168   : > { %v4978_v19 = vmax.f32 %v4977_v42, 0.0  ;;  %v1393_v50 = vmul.f32 %v4135_v60, %v1337_v5  ;;  %v4981_v42 = vld [vmem:[#allocation72_spill] sm:$0xff] }
 0x169   : > { %v1295_v63 = vadd.f32 %v1263_v3, %v4976_v48  ;;  %v1389_v6 = vmul.f32 %v4135_v60, %v1333_v43  ;;  %v1388_v39 = vmul.f32 %v4133_v7, %v1332_v18 }
 0x16a   : > { %v1299_v4 = vadd.f32 %v1267_v57, %v4978_v19  ;;  %v4982_v19 = vmax.f32 %v4981_v42, 0.0  ;;  %v1439_v5 = vadd.f32 %v1393_v50, %v1392_v51  ;;  %v1252_v51 = vstv %s2356_s13  ;;  %s2513_s13 = scalar_lea.hbm %s4443_s7, 16 }
 0x16b   : > { %v1327_v46 = vmax.f32 %v1295_v63, 0.0 }
 0x16c   : > { %v1331_v27 = vmax.f32 %v1299_v4, 0.0 }
 0x16d   : > { %v1383_v34 = vmul.f32 %v4161_v44, %v1327_v46  ;;  %v1080_v48 = vpop.f32.mrf.mxu2  ;;  %v1109_v57 = vpop.f32.mrf.mxu3 }
 0x16e   : > { %v1387_v3 = vmul.f32 %v4161_v44, %v1331_v27  ;;  %v1271_v10 = vmul.f32 %v1243_v32, %v1080_v48  ;;  %v1275_v23 = vmul.f32 %v1246_v33, %v1109_v57  ;;  %v1430_v33 = vadd.f32 %v1389_v6, %v1388_v39 }
 0x16f   : > { %v1158_v29 = vpop.f32.mrf.mxu1  ;;  %v1414_v52 = vadd.f32 %v1413_v8, %v1383_v34  ;;  %v1440_v8 = vadd.f32 %v1439_v5, %v1394_v20 }
 0x170   : > { %v1423_v13 = vadd.f32 %v1422_v0, %v1387_v3  ;;  %v1303_v63 = vadd.f32 %v1271_v10, %v4980_v41  ;;  %v1307_v4 = vadd.f32 %v1275_v23, %v4982_v19  ;;  %v1431_v27 = vadd.f32 %v1430_v33, %v1390_v14 }
 0x171   : > { %v1415_v43 = vrot.slane %v1414_v52, 4  ;;  %v4179_v41 = vstv %s347_s10  ;;  %v1280_v33 = vmul.f32 %v1252_v51, %v1158_v29  ;;  %v4983_v29 = vmax.f32 %v3613_v54, 0.0 }
 0x172   : > { %v1424_v32 = vrot.slane %v1423_v13, 4  ;;  %v1335_v38 = vmax.f32 %v1303_v63, 0.0  ;;  %v1339_v18 = vmax.f32 %v1307_v4, 0.0 }
 0x173   : > { %v1416_v37 = vadd.f32 %v1415_v43, %v1414_v52 }
 0x174   : > { %v1425_v46 = vadd.f32 %v1424_v32, %v1423_v13  ;;  %v1391_v47 = vmul.f32 %v4161_v44, %v1335_v38  ;;  %v1395_v30 = vmul.f32 %v4161_v44, %v1339_v18 }
 0x175   : > { %v1417_v0 = vrot.slane %v1416_v37, 2 }
 0x176   : > { %v1426_v34 = vrot.slane %v1425_v46, 2  ;;  %v1187_v3 = vpop.f32.mrf.mxu2  ;;  %v1432_v48 = vadd.f32 %v1431_v27, %v1391_v47  ;;  %v1441_v57 = vadd.f32 %v1440_v8, %v1395_v30  ;;  %v1255_v8 = vstv %s2358_s0 }
 0x177   : > { %v1418_v50 = vadd.f32 %v1417_v0, %v1416_v37  ;;  %v1312_v0 = vadd.f32 %v1280_v33, %v4983_v29 }
 0x178   : > { %v1161_v6 = vpop.f32.mrf.mxu1  ;;  %v1427_v10 = vadd.f32 %v1426_v34, %v1425_v46  ;;  %v1433_v23 = vrot.slane %v1432_v48, 4  ;;  %v1442_v39 = vrot.slane %v1441_v57, 4 }
 0x179   : > { %v1216_v52 = vpop.f32.mrf.mxu3  ;;  %v1419_v13 = vrot.slane %v1418_v50, 1  ;;  %v1281_v63 = vmul.f32 %v1252_v51, %v1161_v6 }
 0x17a   : > { %v1428_v14 = vrot.slane %v1427_v10, 1  ;;  %v1434_v20 = vadd.f32 %v1433_v23, %v1432_v48  ;;  %v1443_v58 = vadd.f32 %v1442_v39, %v1441_v57  ;;  %v1258_v39 = vstv %s2360_s12 }
 0x17b   : > { %v1420_v19 = vadd.f32 %v1419_v13, %v1418_v50  ;;  %v1313_v47 = vadd.f32 %v1281_v63, %v729_v15 }
 0x17c   : > { %v1129_v42 = vpop.f32.mrf.mxu0  ;;  %v1429_v4 = vadd.f32 %v1428_v14, %v1427_v10  ;;  %v1435_v43 = vrot.slane %v1434_v20, 2  ;;  %v1444_v32 = vrot.slane %v1443_v58, 2  ;;  %v1284_v10 = vmul.f32 %v1255_v8, %v1187_v3 }
 0x17d   : > { %v4182_v38 = vadd.f32 %v4179_v41, %v1420_v19  ;;  %v1345_v23 = vmax.f32 %v1313_v47, 0.0  ;;  %v4196_v14 = vstv %s4177_s30 }
 0x17e   : > { %v1190_v5 = vpop.f32.mrf.mxu2  ;;  %v4185_v18 = vadd.f32 %v4179_v41, %v1429_v4  ;;  %v1436_v37 = vadd.f32 %v1435_v43, %v1434_v20  ;;  %v1445_v46 = vadd.f32 %v1444_v32, %v1443_v58  ;;  %v1344_v20 = vmax.f32 %v1312_v0, 0.0 }
 0x17f   : > { %1509 = vmatmul.f32.vlgmr.msra.gmra.mxu0 %v4182_v38  ;;  %v1285_v57 = vmul.f32 %v1255_v8, %v1190_v5  ;;  %v1316_v3 = vadd.f32 %v1284_v10, %v732_v24  ;;  %v1288_v4 = vmul.f32 %v1258_v39, %v1216_v52  ;;  %v1401_v33 = vmul.f32 %v4135_v60, %v1345_v23 }
 0x180   : > { %1529 = vmatmul.f32.vlgmr.msra.gmra.mxu1 %v4185_v18  ;;  %v1437_v34 = vrot.slane %v1436_v37, 1  ;;  %v1446_v48 = vrot.slane %v1445_v46, 1  ;;  %v4986_v23 = vmax.f32 %v3877_v25, 0.0 }
 0x181   : > { %v1317_v58 = vadd.f32 %v1285_v57, %v733_v62  ;;  %v1400_v62 = vmul.f32 %v4133_v7, %v1344_v20 }
 0x182   : > { %v1164_v27 = vpop.f32.mrf.mxu1  ;;  %v1219_v50 = vpop.f32.mrf.mxu3  ;;  %v1438_v45 = vadd.f32 %v1437_v34, %v1436_v37  ;;  %v1447_v15 = vadd.f32 %v1446_v48, %v1445_v46  ;;  %v1276_v37 = vmul.f32 %v4196_v14, %v1129_v42 }
 0x183   : > { %v1282_v30 = vmul.f32 %v1252_v51, %v1164_v27  ;;  %v1289_v19 = vmul.f32 %v1258_v39, %v1219_v50  ;;  %v1349_v24 = vmax.f32 %v1317_v58, 0.0  ;;  %v1457_v0 = vadd.f32 %v1401_v33, %v1400_v62 }
 0x184   : > { %v1132_v13 = vpop.f32.mrf.mxu0  ;;  %v4199_v54 = vadd.f32 %v4179_v41, %v1438_v45  ;;  %v1308_v28 = vadd.f32 %v1276_v37, %v724_v1  ;;  %v4987_v62 = vmax.f32 %v3909_v35, 0.0 }
 0x185   : > { %v1314_v6 = vadd.f32 %v1282_v30, %v730_v49  ;;  %v4204_v49 = vadd.f32 %v4179_v41, %v1447_v15  ;;  %v1277_v5 = vmul.f32 %v4196_v14, %v1132_v13  ;;  %v1321_v46 = vadd.f32 %v1289_v19, %v737_v16 }
 0x186   : > { %1549 = vmatmul.f32.vlgmr.msra.gmra.mxu2 %v4199_v54  ;;  %v1348_v30 = vmax.f32 %v1316_v3, 0.0  ;;  %v4984_v16 = vmax.f32 %v3844_v12, 0.0  ;;  %v1405_v48 = vmul.f32 %v4135_v60, %v1349_v24  ;;  %v1340_v20 = vmax.f32 %v1308_v28, 0.0 }
 0x187   : > { %v1346_v63 = vmax.f32 %v1314_v6, 0.0  ;;  %v1193_v17 = vpop.f32.mrf.mxu2  ;;  %1569 = vmatmul.f32.vlgmr.msra.gmra.mxu3 %v4204_v49  ;;  %v1309_v21 = vadd.f32 %v1277_v5, %v725_v55  ;;  %v4985_v55 = vmax.f32 %v3906_v31, 0.0 }
 0x188   : > { %v1286_v43 = vmul.f32 %v1255_v8, %v1193_v17  ;;  %v1404_v40 = vmul.f32 %v4133_v7, %v1348_v30  ;;  %v1396_v24 = vmul.f32 %v4133_v7, %v1340_v20 }
 0x189   : > { %v1402_v52 = vmul.f32 %v4147_v22, %v1346_v63  ;;  %v1341_v1 = vmax.f32 %v1309_v21, 0.0 }
 0x18a   : > { %v1318_v26 = vadd.f32 %v1286_v43, %v734_v53  ;;  %v1222_v47 = vpop.f32.mrf.mxu3  ;;  %v1466_v58 = vadd.f32 %v1405_v48, %v1404_v40 }
 0x18b   : > { %v1167_v32 = vpop.f32.mrf.mxu1  ;;  %v1290_v29 = vmul.f32 %v1258_v39, %v1222_v47  ;;  %v1458_v36 = vadd.f32 %v1457_v0, %v1402_v52  ;;  %v1397_v43 = vmul.f32 %v4135_v60, %v1341_v1  ;;  %v4988_v47 = vmax.f32 %v3948_v59, 0.0 }
 0x18c   : > { %v1283_v56 = vmul.f32 %v1252_v51, %v1167_v32  ;;  %v1320_v51 = vadd.f32 %v1288_v4, %v736_v11  ;;  %v1350_v53 = vmax.f32 %v1318_v26, 0.0  ;;  %v1353_v11 = vmax.f32 %v1321_v46, 0.0 }
 0x18d   : > { %v1322_v2 = vadd.f32 %v1290_v29, %v4984_v16 }
 0x18e   : > { %v1315_v27 = vadd.f32 %v1283_v56, %v731_v61  ;;  %v1352_v9 = vmax.f32 %v1320_v51, 0.0  ;;  %v1406_v12 = vmul.f32 %v4147_v22, %v1350_v53  ;;  %v1409_v63 = vmul.f32 %v4135_v60, %v1353_v11 }
 0x18f   : > { %v1354_v15 = vmax.f32 %v1322_v2, 0.0  ;;  %v1448_v51 = vadd.f32 %v1397_v43, %v1396_v24 }
 0x190   : > { %v1347_v42 = vmax.f32 %v1315_v27, 0.0  ;;  %v1135_v34 = vpop.f32.mrf.mxu0  ;;  %v1196_v6 = vpop.f32.mrf.mxu2  ;;  %v1467_v32 = vadd.f32 %v1466_v58, %v1406_v12 }
 0x191   : > { %v1278_v61 = vmul.f32 %v4196_v14, %v1135_v34  ;;  %v1287_v10 = vmul.f32 %v1255_v8, %v1196_v6  ;;  %v1408_v8 = vmul.f32 %v4133_v7, %v1352_v9  ;;  %v1410_v56 = vmul.f32 %v4147_v22, %v1354_v15 }
 0x192   : > { %v1403_v57 = vmul.f32 %v4161_v44, %v1347_v42 }
 0x193   : > { %v1310_v50 = vadd.f32 %v1278_v61, %v4985_v55  ;;  %v1319_v13 = vadd.f32 %v1287_v10, %v4986_v23  ;;  %v1475_v52 = vadd.f32 %v1409_v63, %v1408_v8 }
 0x194   : > { %v1459_v45 = vadd.f32 %v1458_v36, %v1403_v57 }
 0x195   : > { %v1225_v17 = vpop.f32.mrf.mxu3  ;;  %v1342_v3 = vmax.f32 %v1310_v50, 0.0  ;;  %v1351_v4 = vmax.f32 %v1319_v13, 0.0  ;;  %v1476_v0 = vadd.f32 %v1475_v52, %v1410_v56  ;;  %v2455_v56 = vld [vmem:[%s3053_s9] sm:$0x7] }
 0x196   : > { %v1460_v19 = vrot.slane %v1459_v45, 4  ;;  %v1291_v31 = vmul.f32 %v1258_v39, %v1225_v17 }
 0x197   : > { %v1407_v25 = vmul.f32 %v4161_v44, %v1351_v4  ;;  %v1398_v46 = vmul.f32 %v4147_v22, %v1342_v3 }
 0x198   : > { %v1461_v33 = vadd.f32 %v1460_v19, %v1459_v45  ;;  %v1138_v5 = vpop.f32.mrf.mxu0  ;;  %v1323_v37 = vadd.f32 %v1291_v31, %v4987_v62 }
 0x199   : > { %v1279_v26 = vmul.f32 %v4196_v14, %v1138_v5  ;;  %v1468_v27 = vadd.f32 %v1467_v32, %v1407_v25  ;;  %v1449_v14 = vadd.f32 %v1448_v51, %v1398_v46  ;;  %v1694_v25 = vrot.slane %v2455_v56, 1 }
 0x19a   : > { %v1462_v39 = vrot.slane %v1461_v33, 2  ;;  %v1355_v60 = vmax.f32 %v1323_v37, 0.0 }
 0x19b   : > { %v1311_v30 = vadd.f32 %v1279_v26, %v4988_v47  ;;  %v1469_v21 = vrot.slane %v1468_v27, 4  ;;  %v2456_v26 = vld [vmem:[%s3053_s9 + $0xc] sm:$0x7] }
 0x19c   : > { %v1463_v29 = vadd.f32 %v1462_v39, %v1461_v33  ;;  %v1411_v35 = vmul.f32 %v4161_v44, %v1355_v60  ;;  %v1697_v24 = vrot.slane %v2456_v26, 1 }
 0x19d   : > { %v1343_v53 = vmax.f32 %v1311_v30, 0.0  ;;  %v1470_v34 = vadd.f32 %v1469_v21, %v1468_v27  ;;  %v2457_v30 = vld [vmem:[%s3053_s9 + $0x4] sm:$0x7] }
 0x19e   : > { %v1464_v42 = vrot.slane %v1463_v29, 1  ;;  %v1477_v7 = vadd.f32 %v1476_v0, %v1411_v35  ;;  %v1695_v51 = vrot.slane %v2457_v30, 1  ;;  %v2458_v35 = vld [vmem:[%s3053_s9 + $0x18] sm:$0x7] }
 0x19f   : > { %v1399_v28 = vmul.f32 %v4161_v44, %v1343_v53  ;;  %v1471_v22 = vrot.slane %v1470_v34, 2  ;;  %v1700_v53 = vrot.slane %v2458_v35, 1 }
 0x1a0   : > { %v1465_v16 = vadd.f32 %v1464_v42, %v1463_v29  ;;  %v1478_v2 = vrot.slane %v1477_v7, 4 }
 0x1a1   : > { %v1450_v61 = vadd.f32 %v1449_v14, %v1399_v28  ;;  %v1472_v48 = vadd.f32 %v1471_v22, %v1470_v34  ;;  %v2459_v28 = vld [vmem:[%s3053_s9 + $0x8] sm:$0x7]  ;;  %v2460_v22 = vld [vmem:[%s3053_s9 + $0x10] sm:$0x7] }
 0x1a2   : > { %v4253_v59 = vadd.f32 %v4179_v41, %v1465_v16  ;;  %v1479_v36 = vadd.f32 %v1478_v2, %v1477_v7  ;;  %v1696_v16 = vrot.slane %v2459_v28, 1  ;;  %v1698_v2 = vrot.slane %v2460_v22, 1 }
 0x1a3   : > { %v1451_v11 = vrot.slane %v1450_v61, 4  ;;  %v1473_v40 = vrot.slane %v1472_v48, 1 }
 0x1a4   : > { %1609 = vmatmul.f32.vlgmr.msrb.gmra.mxu1 %v4253_v59  ;;  %v1480_v57 = vrot.slane %v1479_v36, 2 }
 0x1a5   : > { %v1452_v6 = vadd.f32 %v1451_v11, %v1450_v61  ;;  %v1474_v10 = vadd.f32 %v1473_v40, %v1472_v48 }
 0x1a6   : > { %v1481_v55 = vadd.f32 %v1480_v57, %v1479_v36 }
 0x1a7   : > { %v1453_v50 = vrot.slane %v1452_v6, 2  ;;  %v4257_v44 = vadd.f32 %v4179_v41, %v1474_v10 }
 0x1a8   : > { %v1482_v1 = vrot.slane %v1481_v55, 1 }
 0x1a9   : > { %v1454_v9 = vadd.f32 %v1453_v50, %v1452_v6  ;;  %1629 = vmatmul.f32.vlgmr.msrb.gmra.mxu2 %v4257_v44  ;;  %v2461_v6 = vld [vmem:[%s3053_s9 + $0x14] sm:$0x7] }
 0x1aa   : > { %v1483_v12 = vadd.f32 %v1482_v1, %v1481_v55  ;;  %v1699_v40 = vrot.slane %v2461_v6, 1  ;;  %v2462_v55 = vld [vmem:[%s3053_s9 + $0x1c] sm:$0x7]  ;;  %s1905_s9 = scalar_lea.hbm %s4443_s7, %s2708_s22 }
 0x1ab   : > { %v1455_v45 = vrot.slane %v1454_v9, 1  ;;  %v1701_v50 = vrot.slane %v2462_v55, 1  ;;  %s4398_s22 = sshll.u32 %s1905_s9, 4  ;;  %s1909_s22 = int_to_ptr.hbm [resolvable:$true] %s4398_s22 }
 0x1ac   : > { %v4261_v15 = vadd.f32 %v4179_v41, %v1483_v12  ;;  %s2507_s25 = sshra.s32 %s1909_s22, 4  ;;  %s2508_s25 = int_to_ptr.hbm [resolvable:$true] %s2507_s25 }
 0x1ad   : > { %v1456_v23 = vadd.f32 %v1455_v45, %v1454_v9  ;;  %s2509_s18 = scalar_lea.hbm %s2508_s25, 8  ;;  %p2514_p1 = scmp.lt.s32.totalorder %s2508_s25, %s4443_s7 }
 0x1ae   : > { %1649 = vmatmul.f32.vlgmr.msrb.gmra.mxu3 %v4261_v15  ;;  %p2510_p6 = scmp.ne.s32.totalorder %s2508_s25, %s2509_s18  ;;  %p2515_p3 = scmp.lt.s32.totalorder %s2513_s13, %s2509_s18 }
 0x1af   : > { %v4265_v13 = vadd.f32 %v4179_v41, %v1456_v23 }
 0x1b0   : > { %p2511_p13 = pnand %p2510_p6, %p2661_p11  ;;  %p2516_p4 = por %p2515_p3, %p2514_p1 }
 0x1b1   : > { %1589 = vmatmul.f32.vlgmr.msrb.gmra.mxu0 %v4265_v13 }
 0x1b2   : > { %p2512_p0 = pneg %p2511_p13 }
 0x1b4   : > { %p2517_p7 = pnand %p2516_p4, %p2512_p0 }
 0x1fc   : > { %v1510_v20 = vpop.f32.mrf.mxu0 }
 0x1fd   : > { %v1530_v58 = vpop.f32.mrf.mxu1  ;;  %v1653_v63 = vmul.f32 %v1510_v20, %v1510_v20  ;;  %v1710_v37 = vmul.f32 %v1694_v25, %v1510_v20 }
 0x1fe   : > { %v1654_v19 = vmul.f32 %v1530_v58, %v1530_v58  ;;  %v1711_v14 = vmul.f32 %v1695_v51, %v1530_v58 }
 0x1ff   : > { %v1662_v3 = vsel %vm1661_vm0, %v1653_v63, 0.0  ;;  %v1718_v52 = vsel %vm1661_vm0, %v1710_v37, 0.0 }
 0x200   : > { %v1665_v17 = vsel %vm1661_vm0, %v1654_v19, 0.0  ;;  %1663 = vadd.xlane.f32.xlu1 %v1662_v3  ;;  %v1721_v61 = vsel %vm1661_vm0, %v1711_v14, 0.0 }
 0x201   : > { %1666 = vadd.xlane.f32.xlu2 %v1665_v17 }
 0x209   : > { %v1550_v4 = vpop.f32.mrf.mxu2 }
 0x20a   : > { %v1655_v31 = vmul.f32 %v1550_v4, %v1550_v4  ;;  %v1570_v8 = vpop.f32.mrf.mxu3  ;;  %v1712_v11 = vmul.f32 %v1696_v16, %v1550_v4 }
 0x20b   : > { %v1656_v41 = vmul.f32 %v1570_v8, %v1570_v8  ;;  %v1713_v47 = vmul.f32 %v1697_v24, %v1570_v8 }
 0x20c   : > { %v1668_v43 = vsel %vm1661_vm0, %v1655_v31, 0.0  ;;  %v1724_v9 = vsel %vm1661_vm0, %v1712_v11, 0.0 }
 0x20d   : > { %1669 = vadd.xlane.f32.xlu0 %v1668_v43  ;;  %v1671_v32 = vsel %vm1661_vm0, %v1656_v41, 0.0  ;;  %v1727_v42 = vsel %vm1661_vm0, %v1713_v47, 0.0 }
 0x20e   : > { %1672 = vadd.xlane.f32.xlu2 %v1671_v32 }
 0x221   : > { %v1610_v33 = vpop.f32.mrf.mxu1 }
 0x222   : > { %v1658_v5 = vmul.f32 %v1610_v33, %v1610_v33  ;;  %v1715_v1 = vmul.f32 %v1699_v40, %v1610_v33 }
 0x224   : > { %v1677_v62 = vsel %vm1661_vm0, %v1658_v5, 0.0  ;;  %v1733_v23 = vsel %vm1661_vm0, %v1715_v1, 0.0 }
 0x225   : > { %1678 = vadd.xlane.f32.xlu2 %v1677_v62 }
 0x22c   : > { %v1630_v39 = vpop.f32.mrf.mxu2 }
 0x22d   : > { %1719 = vadd.xlane.f32.xlu2 %v1718_v52  ;;  %v1659_v27 = vmul.f32 %v1630_v39, %v1630_v39  ;;  %v1716_v7 = vmul.f32 %v1700_v53, %v1630_v39 }
 0x22e   : > { %v1590_v46 = vpop.f32.mrf.mxu0 }
 0x22f   : > { %v1657_v60 = vmul.f32 %v1590_v46, %v1590_v46  ;;  %v1680_v29 = vsel %vm1661_vm0, %v1659_v27, 0.0  ;;  %v1736_v36 = vsel %vm1661_vm0, %v1716_v7, 0.0  ;;  %v1714_v57 = vmul.f32 %v1698_v2, %v1590_v46 }
 0x230   : > { %1681 = vadd.xlane.f32.xlu0 %v1680_v29 }
 0x231   : > { %v1674_v0 = vsel %vm1661_vm0, %v1657_v60, 0.0  ;;  %v1650_v21 = vpop.f32.mrf.mxu3  ;;  %v1730_v10 = vsel %vm1661_vm0, %v1714_v57, 0.0 }
 0x232   : > { %1675 = vadd.xlane.f32.xlu1 %v1674_v0  ;;  %v1660_v34 = vmul.f32 %v1650_v21, %v1650_v21  ;;  %v1717_v12 = vmul.f32 %v1701_v50, %v1650_v21 }
 0x234   : > { %v1683_v48 = vsel %vm1661_vm0, %v1660_v34, 0.0  ;;  %v1739_v45 = vsel %vm1661_vm0, %v1717_v12, 0.0 }
 0x235   : > { %1728 = vadd.xlane.f32.xlu2 %v1727_v42 }
 0x238   : > { %1722 = vadd.xlane.f32.xlu0 %v1721_v61 }
 0x23a   : > { %1684 = vadd.xlane.f32.xlu1 %v1683_v48 }
 0x23d   : > { %1737 = vadd.xlane.f32.xlu2 %v1736_v36 }
 0x240   : > { %1731 = vadd.xlane.f32.xlu0 %v1730_v10 }
 0x242   : > { %1725 = vadd.xlane.f32.xlu1 %v1724_v9 }
 0x248   : > { %1740 = vadd.xlane.f32.xlu0 %v1739_v45 }
 0x24a   : > { %1734 = vadd.xlane.f32.xlu1 %v1733_v23 }
 0x273   : > { %v1664_v20 = vpop.xlane.xlu1 %1663 }
 0x274   : > { %v1667_v58 = vpop.xlane.xlu2 %1666  ;;  %v1742_v63 = vmax.f32 %v1664_v20, 1e-16 }
 0x275   : > { %v4292_v4 = vmax.f32 %v1667_v58, 1e-16 }
 0x276   : > { %2431 = vrcp.f32 %v1742_v63  ;;  %v1761_v24 = vand.u32 2147483648, %v1742_v63  ;;  %vm1755_vm2 = vweird.f32 %v1742_v63  ;;  %v1759_v39 = vand.u32 2147483647, %v1742_v63 }
 0x277   : > { %vm1770_vm10 = vweird.f32 %v4292_v4  ;;  %v1774_v10 = vand.u32 2147483647, %v4292_v4 }
 0x278   : > { %v1762_v30 = vor.u32 1.1754944e-38, %v1761_v24  ;;  %vm1760_vm4 = vcmp.eq.f32.partialorder %v1759_v39, 8.507059e+37 }
 0x279   : > { %vm1775_vm13 = vcmp.eq.f32.partialorder %v1774_v10, 8.507059e+37 }
 0x27c   : > { %v2432_v3 = vpop.eup %2431 }
 0x27d   : > { %v1751_v31 = vmul.f32 %v2432_v3, %v1742_v63  ;;  %vm1756_vm1 = vweird.f32 %v2432_v3 }
 0x27e   : > { %vm1757_vm3 = vmor %vm1755_vm2, %vm1756_vm1 }
 0x27f   : > { %v1752_v43 = vsub.f32 1.0, %v1751_v31 }
 0x280   : > { %v1670_v8 = vpop.xlane.xlu0 %1669 }
 0x281   : > { %v1673_v19 = vpop.xlane.xlu2 %1672  ;;  %v4295_v41 = vmax.f32 %v1670_v8, 1e-16  ;;  %v1753_v5 = vmul.f32 %v2432_v3, %v1752_v43 }
 0x282   : > { %v1745_v17 = vmax.f32 %v1673_v19, 1e-16 }
 0x283   : > { %v1754_v37 = vadd.f32 %v2432_v3, %v1753_v5  ;;  %v1791_v58 = vand.u32 2147483648, %v4295_v41  ;;  %vm1785_vm14 = vweird.f32 %v4295_v41  ;;  %v1789_v63 = vand.u32 2147483647, %v4295_v41 }
 0x284   : > { %2433 = vrcp.f32 %v1745_v17  ;;  %v1806_v42 = vand.u32 2147483648, %v1745_v17  ;;  %vm1800_vm6 = vweird.f32 %v1745_v17  ;;  %v1804_v7 = vand.u32 2147483647, %v1745_v17 }
 0x285   : > { %2435 = vrcp.f32 %v4292_v4  ;;  %v1758_v60 = vsel %vm1757_vm3, %v2432_v3, %v1754_v37  ;;  %vm1790_vm0 = vcmp.eq.f32.partialorder %v1789_v63, 8.507059e+37 }
 0x286   : > { %2437 = vrcp.f32 %v4295_v41  ;;  %v1763_v0 = vsel %vm1760_vm4, %v1762_v30, %v1758_v60  ;;  %v1807_v57 = vor.u32 1.1754944e-38, %v1806_v42  ;;  %vm1805_vm9 = vcmp.eq.f32.partialorder %v1804_v7, 8.507059e+37 }
 0x28a   : > { %v2434_v32 = vpop.eup %2433 }
 0x28b   : > { %v4297_v33 = vpop.eup %2435  ;;  %v1796_v56 = vmul.f32 %v2434_v32, %v1745_v17  ;;  %vm1801_vm5 = vweird.f32 %v2434_v32 }
 0x28c   : > { %v1766_v62 = vmul.f32 %v4297_v33, %v4292_v4  ;;  %v4302_v52 = vpop.eup %2437  ;;  %vm4311_vm7 = vmor %vm1800_vm6, %vm1801_vm5  ;;  %vm1771_vm8 = vweird.f32 %v4297_v33 }
 0x28d   : > { %v1797_v26 = vsub.f32 1.0, %v1796_v56  ;;  %v1781_v51 = vmul.f32 %v4302_v52, %v4295_v41  ;;  %vm1772_vm11 = vmor %vm1770_vm10, %vm1771_vm8  ;;  %vm1786_vm12 = vweird.f32 %v4302_v52  ;;  %v1792_v41 = vor.u32 1.1754944e-38, %v1791_v58 }
 0x28e   : > { %v1767_v46 = vsub.f32 1.0, %v1766_v62  ;;  %vm4346_vm15 = vmor %vm1785_vm14, %vm1786_vm12 }
 0x28f   : > { %v1798_v47 = vmul.f32 %v2434_v32, %v1797_v26  ;;  %v1782_v14 = vsub.f32 1.0, %v1781_v51 }
 0x290   : > { %v1768_v21 = vmul.f32 %v4297_v33, %v1767_v46 }
 0x291   : > { %v1799_v53 = vadd.f32 %v2434_v32, %v1798_v47  ;;  %v1783_v6 = vmul.f32 %v4302_v52, %v1782_v14 }
 0x292   : > { %v1769_v48 = vadd.f32 %v4297_v33, %v1768_v21 }
 0x293   : > { %v1803_v61 = vsel %vm4311_vm7, %v2434_v32, %v1799_v53  ;;  %v1784_v12 = vadd.f32 %v4302_v52, %v1783_v6 }
 0x294   : > { %v1808_v55 = vsel %vm1805_vm9, %v1807_v57, %v1803_v61  ;;  %v1773_v1 = vsel %vm1772_vm11, %v4297_v33, %v1769_v48 }
 0x295   : > { %v1788_v33 = vsel %vm4346_vm15, %v4302_v52, %v1784_v12 }
 0x296   : > { %v1793_v26 = vsel %vm1790_vm0, %v1792_v41, %v1788_v33 }
 0x298   : > { %v1679_v25 = vpop.xlane.xlu2 %1678 }
 0x299   : > { %v4304_v27 = vmax.f32 %v1679_v25, 1e-16 }
 0x29b   : > { %2439 = vrcp.f32 %v4304_v27  ;;  %vm1830_vm1 = vweird.f32 %v4304_v27  ;;  %v1834_v24 = vand.u32 2147483647, %v4304_v27  ;;  %v1836_v21 = vand.u32 2147483648, %v4304_v27 }
 0x2a0   : > { %v1720_v29 = vpop.xlane.xlu2 %1719 }
 0x2a1   : > { %v1764_v35 = vmul.f32 %v1763_v0, %v1720_v29  ;;  %v4325_v40 = vpop.eup %2439 }
 0x2a2   : > { %v1826_v45 = vmul.f32 %v4325_v40, %v4304_v27  ;;  %vm1831_vm6 = vweird.f32 %v4325_v40 }
 0x2a3   : > { %v1870_v34 = vmax.f32 %v1764_v35, 1e-16  ;;  %v1682_v22 = vpop.xlane.xlu0 %1681  ;;  %vm4379_vm11 = vmor %vm1830_vm1, %vm1831_vm6 }
 0x2a4   : > { %v4320_v36 = vmax.f32 %v1682_v22, 1e-16  ;;  %v1827_v5 = vsub.f32 1.0, %v1826_v45 }
 0x2a5   : > { %v1878_v16 = vmul.f32 %v1870_v34, %v4182_v38  ;;  %v1676_v2 = vpop.xlane.xlu1 %1675  ;;  %v1776_v38 = vand.u32 2147483648, %v4292_v4 }
 0x2a6   : > { %v4322_v11 = vmax.f32 %v1676_v2, 1e-16  ;;  %2441 = vrcp.f32 %v4320_v36  ;;  %v1851_v39 = vand.u32 2147483648, %v4320_v36  ;;  %v1828_v60 = vmul.f32 %v4325_v40, %v1827_v5 }
 0x2a7   : > { %1886 = vst [vmem:[%s4327_s20] sm:$0x1] %v1878_v16  ;;  %v1777_v20 = vor.u32 1.1754944e-38, %v1776_v38  ;;  %v1849_v30 = vand.u32 2147483647, %v4320_v36  ;;  %vm1845_vm4 = vweird.f32 %v4320_v36 }
 0x2a8   : > { %v1729_v50 = vpop.xlane.xlu2 %1728  ;;  %2443 = vrcp.f32 %v4322_v11  ;;  %v1821_v51 = vand.u32 2147483648, %v4322_v11  ;;  %v1819_v0 = vand.u32 2147483647, %v4322_v11  ;;  %vm1815_vm5 = vweird.f32 %v4322_v11 }
 0x2a9   : > { %v1809_v9 = vmul.f32 %v1808_v55, %v1729_v50  ;;  %v1778_v3 = vsel %vm1775_vm13, %v1777_v20, %v1773_v1  ;;  %v1852_v42 = vor.u32 1.1754944e-38, %v1851_v39  ;;  %v1829_v28 = vadd.f32 %v4325_v40, %v1828_v60 }
 0x2aa   : > { %vm1850_vm8 = vcmp.eq.f32.partialorder %v1849_v30, 8.507059e+37  ;;  %v1822_v22 = vor.u32 1.1754944e-38, %v1821_v51  ;;  %vm1820_vm10 = vcmp.eq.f32.partialorder %v1819_v0, 8.507059e+37  ;;  %v1837_v50 = vor.u32 1.1754944e-38, %v1836_v21 }
 0x2ab   : > { %v1873_v23 = vmax.f32 %v1809_v9, 1e-16  ;;  %v1723_v17 = vpop.xlane.xlu0 %1722  ;;  %v1833_v12 = vsel %vm4379_vm11, %v4325_v40, %v1829_v28  ;;  %vm1835_vm13 = vcmp.eq.f32.partialorder %v1834_v24, 8.507059e+37 }
 0x2ac   : > { %v2442_v8 = vpop.eup %2441  ;;  %v1779_v43 = vmul.f32 %v1778_v3, %v1723_v17  ;;  %v1838_v40 = vsel %vm1835_vm13, %v1837_v50, %v1833_v12 }
 0x2ad   : > { %v1881_v19 = vmul.f32 %v1873_v23, %v4204_v49  ;;  %v1685_v4 = vpop.xlane.xlu1 %1684  ;;  %v1841_v49 = vmul.f32 %v2442_v8, %v4320_v36  ;;  %vm1846_vm2 = vweird.f32 %v2442_v8 }
 0x2ae   : > { %v4350_v32 = vmax.f32 %v1685_v4, 1e-16  ;;  %v2444_v56 = vpop.eup %2443  ;;  %v1871_v25 = vmax.f32 %v1779_v43, 1e-16  ;;  %vm1847_vm7 = vmor %vm1845_vm4, %vm1846_vm2 }
 0x2af   : > { %1889 = vst [vmem:[%s4327_s20 + $0x3] sm:$0x1] %v1881_v19  ;;  %v1811_v62 = vmul.f32 %v2444_v56, %v4322_v11  ;;  %v1842_v37 = vsub.f32 1.0, %v1841_v49  ;;  %vm1816_vm3 = vweird.f32 %v2444_v56 }
 0x2b0   : > { %2445 = vrcp.f32 %v4350_v32  ;;  %v1879_v52 = vmul.f32 %v1871_v25, %v4185_v18  ;;  %vm1817_vm9 = vmor %vm1815_vm5, %vm1816_vm3  ;;  %v1738_v48 = vpop.xlane.xlu2 %1737  ;;  %v1866_v1 = vand.u32 2147483648, %v4350_v32  ;;  %v1864_v27 = vand.u32 2147483647, %v4350_v32 }
 0x2b1   : > { %v1812_v46 = vsub.f32 1.0, %v1811_v62  ;;  %v1843_v47 = vmul.f32 %v2442_v8, %v1842_v37  ;;  %vm1860_vm14 = vweird.f32 %v4350_v32 }
 0x2b2   : > { %1887 = vst [vmem:[%s4327_s20 + $0x1] sm:$0x1] %v1879_v52  ;;  %v1867_v17 = vor.u32 1.1754944e-38, %v1866_v1  ;;  %vm1865_vm0 = vcmp.eq.f32.partialorder %v1864_v27, 8.507059e+37 }
 0x2b3   : > { %v1813_v29 = vmul.f32 %v2444_v56, %v1812_v46  ;;  %v1844_v35 = vadd.f32 %v2442_v8, %v1843_v47  ;;  %v1732_v14 = vpop.xlane.xlu0 %1731 }
 0x2b5   : > { %v1726_v18 = vpop.xlane.xlu1 %1725  ;;  %v1814_v34 = vadd.f32 %v2444_v56, %v1813_v29  ;;  %v1848_v16 = vsel %vm1847_vm7, %v2442_v8, %v1844_v35 }
 0x2b6   : > { %v2446_v53 = vpop.eup %2445  ;;  %v1794_v7 = vmul.f32 %v1793_v26, %v1726_v18  ;;  %v1853_v61 = vsel %vm1850_vm8, %v1852_v42, %v1848_v16 }
 0x2b7   : > { %v1856_v2 = vmul.f32 %v2446_v53, %v4350_v32  ;;  %v1818_v36 = vsel %vm1817_vm9, %v2444_v56, %v1814_v34  ;;  %v1854_v57 = vmul.f32 %v1853_v61, %v1738_v48  ;;  %vm1861_vm12 = vweird.f32 %v2446_v53 }
 0x2b8   : > { %v1872_v11 = vmax.f32 %v1794_v7, 1e-16  ;;  %v1823_v6 = vsel %vm1820_vm10, %v1822_v22, %v1818_v36  ;;  %vm1862_vm15 = vmor %vm1860_vm14, %vm1861_vm12 }
 0x2b9   : > { %v1857_v38 = vsub.f32 1.0, %v1856_v2  ;;  %v1824_v10 = vmul.f32 %v1823_v6, %v1732_v14  ;;  %v1876_v45 = vmax.f32 %v1854_v57, 1e-16 }
 0x2ba   : > { %v1880_v9 = vmul.f32 %v1872_v11, %v4199_v54 }
 0x2bb   : > { %v1858_v23 = vmul.f32 %v2446_v53, %v1857_v38  ;;  %v1874_v20 = vmax.f32 %v1824_v10, 1e-16  ;;  %v1884_v54 = vmul.f32 %v1876_v45, %v4257_v44  ;;  %v1741_v44 = vpop.xlane.xlu0 %1740 }
 0x2bc   : > { %1888 = vst [vmem:[%s4327_s20 + $0x2] sm:$0x1] %v1880_v9 }
 0x2bd   : > { %v1859_v58 = vadd.f32 %v2446_v53, %v1858_v23  ;;  %v1735_v63 = vpop.xlane.xlu1 %1734  ;;  %v1882_v19 = vmul.f32 %v1874_v20, %v4265_v13  ;;  %1892 = vst [vmem:[%s4327_s20 + $0x6] sm:$0x1] %v1884_v54 }
 0x2be   : > { %v1839_v3 = vmul.f32 %v1838_v40, %v1735_v63 }
 0x2bf   : > { %v1863_v4 = vsel %vm1862_vm15, %v2446_v53, %v1859_v58  ;;  %1890 = vst [vmem:[%s4327_s20 + $0x4] sm:$0x1] %v1882_v19 }
 0x2c0   : > { %v1868_v31 = vsel %vm1865_vm0, %v1867_v17, %v1863_v4  ;;  %v1875_v8 = vmax.f32 %v1839_v3, 1e-16 }
 0x2c1   : > { %v1869_v43 = vmul.f32 %v1868_v31, %v1741_v44 }
 0x2c2   : > { %v1883_v13 = vmul.f32 %v1875_v8, %v4253_v59 }
 0x2c3   : > { %v1877_v32 = vmax.f32 %v1869_v43, 1e-16 }
 0x2c4   : > { %1891 = vst [vmem:[%s4327_s20 + $0x5] sm:$0x1] %v1883_v13 }
 0x2c5   : > { %v1885_v33 = vmul.f32 %v1877_v32, %v4261_v15 }
 0x2c7   : > { %1893 = vst [vmem:[%s4327_s20 + $0x7] sm:$0x1] %v1885_v33 }
 0x2c8   : > { %2520 = shalt.err (!%p2517_p7)
}
 0x2c9   : > { %s2566_s23 = smov 16   ;;  %s2567_s19 = smov 1  }
 0x2ca   : > { %2363 = dma.vmem_to_hbm [thread:$0]  (%p2661_p11), %s1907_s17, 128, %s1909_s22, %s1895_s24, %s2566_s23, %s2566_s23, %s2567_s19  }
 0x2cb PF: > { %s1923_s20 = sand.u32 1, %s2547_s26   ;;  %p4995_p5 = scmp.ge.s32.totalorder %s2559_s29, 2 }
 0x2cc   : > { %s1924_s16 = scalar_lea.sflag [#allocation5], %s1923_s20 }
 0x2cd   : > { %p2370_p8 = pnand %p4995_p5, %p2665_p12 }
 0x2cf   : > { %p2371_p10 = pneg %p2370_p8 }
 0x2d1   : > { %2542 = dma.done.wait (%p2371_p10), %s1924_s16, 128  }
 0x2d2   : > { %2544 = vsyncadd (%p2371_p10), %s1924_s16, 4294967168  ;;  %p21_p2 = scmp.ge.s32.totalorder %s2636_s8, 4   ;;  %s4996_s26 = smov %s2551_s27 }
 0x2d3   : > { %s4997_s27 = smov %s2555_s28  ;;  %s4998_s28 = smov %s2648_s11 }
 0x2d4   : > { %s4999_s29 = smov %s2636_s8  ;;  %23 = sbr.rel (!%p21_p2) target bundleno = 7 (0x7), region = 99 }
 0x2d9   :  { %1930 = vsyncpa [#allocation4], 1 }
 0x2da   :  { %1932 = vsyncpa [#allocation4 + $0x1], 1 }
 0x2db   :  { %1933 = vsyncpa [#allocation5], 1 }
 0x2dc   :  { %1935 = vsyncpa [#allocation5 + $0x1], 1 }

</bundles_post_ra>
